<compile_context>
chip_gen: v7x
topology: tpu7x:2x2x1
jax: 0.10.0
libtpu: 0.0.40
codegen_flags: <defaults>
</compile_context>

<pallas_src>
import functools

import jax
import jax.numpy as jnp
from jax.experimental import pallas as pl
from jax.experimental.pallas import tpu as pltpu


def _grad_data_fitting_kernel(k_ref, kt_ref, x_ref, y_ref, out_ref,
                              *, C, H, W, kh, kw):
    """One batch sample (all C channels), lane-dense (C, H*W) layout.

    k_ref, kt_ref : (B*kh*kw,) float32 blur / flipped-blur kernels   (SMEM)
    x_ref, y_ref  : (C, H*W)                                          (VMEM)
    out_ref       : (C, H*W)                                          (VMEM)
    """
    b = pl.program_id(0)
    base = b * (kh * kw)
    HW = H * W
    cu, cv = kh // 2, kw // 2

    # Lane position within each image row -- fixes the W-axis wrap of a flat
    # roll.  Hoisted: computed once, reused by both conv passes.
    lane_in_row = jax.lax.broadcasted_iota(jnp.int32, (C, HW), 1) % W

    def roll_w(img, dv):
        # Circular shift by dv along W of the row-major (H, W) flattening.
        dv = dv % W
        if dv == 0:
            return img
        main = pltpu.roll(img, shift=dv, axis=1)           # correct for j >= dv
        wrap = pltpu.roll(img, shift=HW + dv - W, axis=1)  # correct for j <  dv
        return jnp.where(lane_in_row >= dv, main, wrap)

    def roll_h(img, du):
        # Circular shift by du along H == flat roll by du*W (whole rows wrap).
        s = (du * W) % HW
        if s == 0:
            return img
        return pltpu.roll(img, shift=s, axis=1)

    def circ_conv(img, w_ref):
        # psf2otf-centered circular convolution with this sample's kernel.
        shifted = [roll_w(img, v - cv) for v in range(kw)]   # shared across u
        acc = None
        for u in range(kh):
            row = None
            for v in range(kw):
                w = w_ref[base + u * kw + v]                 # SMEM scalar
                term = w * shifted[v]
                row = term if row is None else row + term
            row = roll_h(row, u - cu)
            acc = row if acc is None else acc + row
        return acc

    x = x_ref[...].astype(jnp.float32)
    z = circ_conv(x, k_ref) - y_ref[...].astype(jnp.float32)   # A x - y
    out_ref[...] = circ_conv(z, kt_ref).astype(out_ref.dtype)  # A^T(A x - y)


def grad_data_fitting(x, y, k, kt):
    """x, y: (B, C, H, W); k, kt: (B, 1, kh, kw) float32 blur kernels."""
    B, C, H, W = x.shape
    _, _, kh, kw = k.shape
    HW = H * W

    # Pure layout glue: fold (H, W) -> H*W so the kernel's lane (last) dim is a
    # multiple of 128 (lane-dense stores / dense vregs).
    xf = x.reshape(B, C, HW)
    yf = y.reshape(B, C, HW)
    kf = k.reshape(B * kh * kw).astype(jnp.float32)     # flat 1-D SMEM tables
    ktf = kt.reshape(B * kh * kw).astype(jnp.float32)

    kernel = functools.partial(_grad_data_fitting_kernel,
                               C=C, H=H, W=W, kh=kh, kw=kw)

    out = pl.pallas_call(
        kernel,
        out_shape=jax.ShapeDtypeStruct((B, C, HW), x.dtype),
        grid=(B,),
        in_specs=[
            pl.BlockSpec(memory_space=pltpu.MemorySpace.SMEM),   # k  (B*kh*kw,)
            pl.BlockSpec(memory_space=pltpu.MemorySpace.SMEM),   # kt (B*kh*kw,)
            pl.BlockSpec((None, C, HW), lambda b: (b, 0, 0)),    # x
            pl.BlockSpec((None, C, HW), lambda b: (b, 0, 0)),    # y
        ],
        out_specs=pl.BlockSpec((None, C, HW), lambda b: (b, 0, 0)),
        compiler_params=pltpu.CompilerParams(
            dimension_semantics=("parallel",)),
    )(kf, ktf, xf, yf)
    return out.reshape(B, C, H, W)


# ----------------------------- reference (plain JAX, FFT-based) ---------------
def _psf2otf(psf, shape):
    kh, kw = psf.shape
    H, W = shape
    pad = jnp.zeros((H, W), psf.dtype).at[:kh, :kw].set(psf)
    pad = jnp.roll(pad, shift=(-(kh // 2), -(kw // 2)), axis=(0, 1))
    return jnp.fft.fft2(pad)


def _fft_conv_ref(x, k):
    B, C, H, W = x.shape
    otf = jax.vmap(lambda kk: _psf2otf(kk[0], (H, W)))(k)        # (B, H, W)
    out = jnp.fft.ifft2(jnp.fft.fft2(x) * otf[:, None, :, :])
    return jnp.real(out).astype(x.dtype)


def _grad_data_fitting_ref(x, y, k, kt):
    Ax = _fft_conv_ref(x, k)
    return _fft_conv_ref(Ax - y, kt)


# ------------------------------------ main ------------------------------------
if __name__ == "__main__":
    key = jax.random.PRNGKey(0)
    kx, ky, kk = jax.random.split(key, 3)

    B, C, H, W = 2, 4, 16, 16
    kh, kw = 5, 5

    x = jax.random.normal(kx, (B, C, H, W), jnp.float32)
    y = jax.random.normal(ky, (B, C, H, W), jnp.float32)
    k = jnp.abs(jax.random.normal(kk, (B, 1, kh, kw), jnp.float32))
    k = k / jnp.sum(k, axis=(-2, -1), keepdims=True)            # blur-kernel-like
    kt = jnp.flip(k, axis=(-2, -1))                              # transposed op

    out = jax.jit(grad_data_fitting)(x, y, k, kt)
    out = jax.block_until_ready(out)

    ref = _grad_data_fitting_ref(x, y, k, kt)
    assert out.shape == (B, C, H, W)
    max_err = float(jnp.max(jnp.abs(out - ref)))
    assert max_err < 1e-3, f"mismatch vs FFT reference: max abs err = {max_err}"

    print("KERNEL_OK")
</pallas_src>

<mosaic_0001>
module attributes {stable_mosaic.version = 11 : i64} {
  func.func @_grad_data_fitting_kernel(%arg0: i32, %arg1: memref<50xf32, #tpu.memory_space<smem>>, %arg2: memref<50xf32, #tpu.memory_space<smem>>, %arg3: memref<1x4x256xf32, #tpu.memory_space<vmem>>, %arg4: memref<1x4x256xf32, #tpu.memory_space<vmem>>, %arg5: memref<1x4x256xf32, #tpu.memory_space<vmem>>) attributes {dimension_semantics = [#tpu.dimension_semantics<parallel>], iteration_bounds = array<i64: 2>, scalar_prefetch = 0 : i64, scratch_operands = 0 : i64, tpu.core_type = #tpu.core_type<tc>, window_params = [{transform_indices = @transform_0, window_bounds = array<i64: 50>}, {transform_indices = @transform_1, window_bounds = array<i64: 50>}, {transform_indices = @transform_2, window_bounds = array<i64: 1, 4, 256>}, {transform_indices = @transform_3, window_bounds = array<i64: 1, 4, 256>}, {transform_indices = @transform_4, window_bounds = array<i64: 1, 4, 256>}]} {
    %c25_i32 = arith.constant 25 : i32
    %0 = arith.muli %arg0, %c25_i32 : i32
    %1 = tpu.iota {dimensions = array<i32: 1>} : vector<4x256xi32>
    %c16_i32 = arith.constant 16 : i32
    %c0_i32 = arith.constant 0 : i32
    %2 = arith.cmpi eq, %c16_i32, %c0_i32 : i32
    %c1_i32 = arith.constant 1 : i32
    %3 = arith.select %2, %c1_i32, %c16_i32 : i32
    %4 = vector.broadcast %3 : i32 to vector<4x256xi32>
    %5 = arith.remsi %1, %4 : vector<4x256xi32>
    %c0_i32_0 = arith.constant 0 : i32
    %6 = vector.broadcast %c0_i32_0 : i32 to vector<4x256xi32>
    %7 = arith.cmpi ne, %5, %6 : vector<4x256xi32>
    %c0_i32_1 = arith.constant 0 : i32
    %8 = vector.broadcast %c0_i32_1 : i32 to vector<4x256xi32>
    %9 = arith.cmpi slt, %5, %8 : vector<4x256xi32>
    %c0_i32_2 = arith.constant 0 : i32
    %10 = arith.cmpi slt, %3, %c0_i32_2 : i32
    %11 = vector.broadcast %10 : i1 to vector<4x256xi1>
    %12 = vector.broadcast %11 : vector<4x256xi1> to vector<4x256xi1>
    %13 = arith.xori %9, %12 : vector<4x256xi1>
    %14 = arith.andi %13, %7 : vector<4x256xi1>
    %15 = vector.broadcast %3 : i32 to vector<4x256xi32>
    %16 = arith.addi %5, %15 : vector<4x256xi32>
    %17 = arith.select %14, %16, %5 : vector<4x256xi1>, vector<4x256xi32>
    %c0 = arith.constant 0 : index
    %c0_3 = arith.constant 0 : index
    %c0_4 = arith.constant 0 : index
    %18 = vector.load %arg3[%c0, %c0_3, %c0_4] : memref<1x4x256xf32, #tpu.memory_space<vmem>>, vector<1x4x256xf32>
    %19 = vector.shape_cast %18 : vector<1x4x256xf32> to vector<4x256xf32>
    %c14_i32 = arith.constant 14 : i32
    %20 = tpu.dynamic_rotate %19 by %c14_i32 dim 1 : vector<4x256xf32>, i32 -> vector<4x256xf32>
    %c254_i32 = arith.constant 254 : i32
    %21 = tpu.dynamic_rotate %19 by %c254_i32 dim 1 : vector<4x256xf32>, i32 -> vector<4x256xf32>
    %c14_i32_5 = arith.constant 14 : i32
    %22 = vector.broadcast %c14_i32_5 : i32 to vector<4x256xi32>
    %23 = arith.cmpi sge, %17, %22 : vector<4x256xi32>
    %24 = arith.select %23, %20, %21 : vector<4x256xi1>, vector<4x256xf32>
    %c15_i32 = arith.constant 15 : i32
    %25 = tpu.dynamic_rotate %19 by %c15_i32 dim 1 : vector<4x256xf32>, i32 -> vector<4x256xf32>
    %c255_i32 = arith.constant 255 : i32
    %26 = tpu.dynamic_rotate %19 by %c255_i32 dim 1 : vector<4x256xf32>, i32 -> vector<4x256xf32>
    %c15_i32_6 = arith.constant 15 : i32
    %27 = vector.broadcast %c15_i32_6 : i32 to vector<4x256xi32>
    %28 = arith.cmpi sge, %17, %27 : vector<4x256xi32>
    %29 = arith.select %28, %25, %26 : vector<4x256xi1>, vector<4x256xf32>
    %c1_i32_7 = arith.constant 1 : i32
    %30 = tpu.dynamic_rotate %19 by %c1_i32_7 dim 1 : vector<4x256xf32>, i32 -> vector<4x256xf32>
    %c241_i32 = arith.constant 241 : i32
    %31 = tpu.dynamic_rotate %19 by %c241_i32 dim 1 : vector<4x256xf32>, i32 -> vector<4x256xf32>
    %c1_i32_8 = arith.constant 1 : i32
    %32 = vector.broadcast %c1_i32_8 : i32 to vector<4x256xi32>
    %33 = arith.cmpi sge, %17, %32 : vector<4x256xi32>
    %34 = arith.select %33, %30, %31 : vector<4x256xi1>, vector<4x256xf32>
    %c2_i32 = arith.constant 2 : i32
    %35 = tpu.dynamic_rotate %19 by %c2_i32 dim 1 : vector<4x256xf32>, i32 -> vector<4x256xf32>
    %c242_i32 = arith.constant 242 : i32
    %36 = tpu.dynamic_rotate %19 by %c242_i32 dim 1 : vector<4x256xf32>, i32 -> vector<4x256xf32>
    %c2_i32_9 = arith.constant 2 : i32
    %37 = vector.broadcast %c2_i32_9 : i32 to vector<4x256xi32>
    %38 = arith.cmpi sge, %17, %37 : vector<4x256xi32>
    %39 = arith.select %38, %35, %36 : vector<4x256xi1>, vector<4x256xf32>
    %c0_i32_10 = arith.constant 0 : i32
    %40 = arith.addi %0, %c0_i32_10 : i32
    %c0_i32_11 = arith.constant 0 : i32
    %41 = arith.addi %40, %c0_i32_11 : i32
    %42 = arith.index_cast %41 : i32 to index
    %43 = memref.load %arg1[%42] : memref<50xf32, #tpu.memory_space<smem>>
    %44 = vector.broadcast %43 : f32 to vector<4x256xf32>
    %45 = arith.mulf %44, %24 : vector<4x256xf32>
    %c0_i32_12 = arith.constant 0 : i32
    %46 = arith.addi %0, %c0_i32_12 : i32
    %c1_i32_13 = arith.constant 1 : i32
    %47 = arith.addi %46, %c1_i32_13 : i32
    %48 = arith.index_cast %47 : i32 to index
    %49 = memref.load %arg1[%48] : memref<50xf32, #tpu.memory_space<smem>>
    %50 = vector.broadcast %49 : f32 to vector<4x256xf32>
    %51 = arith.mulf %50, %29 : vector<4x256xf32>
    %52 = arith.addf %45, %51 : vector<4x256xf32>
    %c0_i32_14 = arith.constant 0 : i32
    %53 = arith.addi %0, %c0_i32_14 : i32
    %c2_i32_15 = arith.constant 2 : i32
    %54 = arith.addi %53, %c2_i32_15 : i32
    %55 = arith.index_cast %54 : i32 to index
    %56 = memref.load %arg1[%55] : memref<50xf32, #tpu.memory_space<smem>>
    %57 = vector.broadcast %56 : f32 to vector<4x256xf32>
    %58 = arith.mulf %57, %19 : vector<4x256xf32>
    %59 = arith.addf %52, %58 : vector<4x256xf32>
    %c0_i32_16 = arith.constant 0 : i32
    %60 = arith.addi %0, %c0_i32_16 : i32
    %c3_i32 = arith.constant 3 : i32
    %61 = arith.addi %60, %c3_i32 : i32
    %62 = arith.index_cast %61 : i32 to index
    %63 = memref.load %arg1[%62] : memref<50xf32, #tpu.memory_space<smem>>
    %64 = vector.broadcast %63 : f32 to vector<4x256xf32>
    %65 = arith.mulf %64, %34 : vector<4x256xf32>
    %66 = arith.addf %59, %65 : vector<4x256xf32>
    %c0_i32_17 = arith.constant 0 : i32
    %67 = arith.addi %0, %c0_i32_17 : i32
    %c4_i32 = arith.constant 4 : i32
    %68 = arith.addi %67, %c4_i32 : i32
    %69 = arith.index_cast %68 : i32 to index
    %70 = memref.load %arg1[%69] : memref<50xf32, #tpu.memory_space<smem>>
    %71 = vector.broadcast %70 : f32 to vector<4x256xf32>
    %72 = arith.mulf %71, %39 : vector<4x256xf32>
    %73 = arith.addf %66, %72 : vector<4x256xf32>
    %c224_i32 = arith.constant 224 : i32
    %74 = tpu.dynamic_rotate %73 by %c224_i32 dim 1 : vector<4x256xf32>, i32 -> vector<4x256xf32>
    %c5_i32 = arith.constant 5 : i32
    %75 = arith.addi %0, %c5_i32 : i32
    %c0_i32_18 = arith.constant 0 : i32
    %76 = arith.addi %75, %c0_i32_18 : i32
    %77 = arith.index_cast %76 : i32 to index
    %78 = memref.load %arg1[%77] : memref<50xf32, #tpu.memory_space<smem>>
    %79 = vector.broadcast %78 : f32 to vector<4x256xf32>
    %80 = arith.mulf %79, %24 : vector<4x256xf32>
    %c5_i32_19 = arith.constant 5 : i32
    %81 = arith.addi %0, %c5_i32_19 : i32
    %c1_i32_20 = arith.constant 1 : i32
    %82 = arith.addi %81, %c1_i32_20 : i32
    %83 = arith.index_cast %82 : i32 to index
    %84 = memref.load %arg1[%83] : memref<50xf32, #tpu.memory_space<smem>>
    %85 = vector.broadcast %84 : f32 to vector<4x256xf32>
    %86 = arith.mulf %85, %29 : vector<4x256xf32>
    %87 = arith.addf %80, %86 : vector<4x256xf32>
    %c5_i32_21 = arith.constant 5 : i32
    %88 = arith.addi %0, %c5_i32_21 : i32
    %c2_i32_22 = arith.constant 2 : i32
    %89 = arith.addi %88, %c2_i32_22 : i32
    %90 = arith.index_cast %89 : i32 to index
    %91 = memref.load %arg1[%90] : memref<50xf32, #tpu.memory_space<smem>>
    %92 = vector.broadcast %91 : f32 to vector<4x256xf32>
    %93 = arith.mulf %92, %19 : vector<4x256xf32>
    %94 = arith.addf %87, %93 : vector<4x256xf32>
    %c5_i32_23 = arith.constant 5 : i32
    %95 = arith.addi %0, %c5_i32_23 : i32
    %c3_i32_24 = arith.constant 3 : i32
    %96 = arith.addi %95, %c3_i32_24 : i32
    %97 = arith.index_cast %96 : i32 to index
    %98 = memref.load %arg1[%97] : memref<50xf32, #tpu.memory_space<smem>>
    %99 = vector.broadcast %98 : f32 to vector<4x256xf32>
    %100 = arith.mulf %99, %34 : vector<4x256xf32>
    %101 = arith.addf %94, %100 : vector<4x256xf32>
    %c5_i32_25 = arith.constant 5 : i32
    %102 = arith.addi %0, %c5_i32_25 : i32
    %c4_i32_26 = arith.constant 4 : i32
    %103 = arith.addi %102, %c4_i32_26 : i32
    %104 = arith.index_cast %103 : i32 to index
    %105 = memref.load %arg1[%104] : memref<50xf32, #tpu.memory_space<smem>>
    %106 = vector.broadcast %105 : f32 to vector<4x256xf32>
    %107 = arith.mulf %106, %39 : vector<4x256xf32>
    %108 = arith.addf %101, %107 : vector<4x256xf32>
    %c240_i32 = arith.constant 240 : i32
    %109 = tpu.dynamic_rotate %108 by %c240_i32 dim 1 : vector<4x256xf32>, i32 -> vector<4x256xf32>
    %110 = arith.addf %74, %109 : vector<4x256xf32>
    %c10_i32 = arith.constant 10 : i32
    %111 = arith.addi %0, %c10_i32 : i32
    %c0_i32_27 = arith.constant 0 : i32
    %112 = arith.addi %111, %c0_i32_27 : i32
    %113 = arith.index_cast %112 : i32 to index
    %114 = memref.load %arg1[%113] : memref<50xf32, #tpu.memory_space<smem>>
    %115 = vector.broadcast %114 : f32 to vector<4x256xf32>
    %116 = arith.mulf %115, %24 : vector<4x256xf32>
    %c10_i32_28 = arith.constant 10 : i32
    %117 = arith.addi %0, %c10_i32_28 : i32
    %c1_i32_29 = arith.constant 1 : i32
    %118 = arith.addi %117, %c1_i32_29 : i32
    %119 = arith.index_cast %118 : i32 to index
    %120 = memref.load %arg1[%119] : memref<50xf32, #tpu.memory_space<smem>>
    %121 = vector.broadcast %120 : f32 to vector<4x256xf32>
    %122 = arith.mulf %121, %29 : vector<4x256xf32>
    %123 = arith.addf %116, %122 : vector<4x256xf32>
    %c10_i32_30 = arith.constant 10 : i32
    %124 = arith.addi %0, %c10_i32_30 : i32
    %c2_i32_31 = arith.constant 2 : i32
    %125 = arith.addi %124, %c2_i32_31 : i32
    %126 = arith.index_cast %125 : i32 to index
    %127 = memref.load %arg1[%126] : memref<50xf32, #tpu.memory_space<smem>>
    %128 = vector.broadcast %127 : f32 to vector<4x256xf32>
    %129 = arith.mulf %128, %19 : vector<4x256xf32>
    %130 = arith.addf %123, %129 : vector<4x256xf32>
    %c10_i32_32 = arith.constant 10 : i32
    %131 = arith.addi %0, %c10_i32_32 : i32
    %c3_i32_33 = arith.constant 3 : i32
    %132 = arith.addi %131, %c3_i32_33 : i32
    %133 = arith.index_cast %132 : i32 to index
    %134 = memref.load %arg1[%133] : memref<50xf32, #tpu.memory_space<smem>>
    %135 = vector.broadcast %134 : f32 to vector<4x256xf32>
    %136 = arith.mulf %135, %34 : vector<4x256xf32>
    %137 = arith.addf %130, %136 : vector<4x256xf32>
    %c10_i32_34 = arith.constant 10 : i32
    %138 = arith.addi %0, %c10_i32_34 : i32
    %c4_i32_35 = arith.constant 4 : i32
    %139 = arith.addi %138, %c4_i32_35 : i32
    %140 = arith.index_cast %139 : i32 to index
    %141 = memref.load %arg1[%140] : memref<50xf32, #tpu.memory_space<smem>>
    %142 = vector.broadcast %141 : f32 to vector<4x256xf32>
    %143 = arith.mulf %142, %39 : vector<4x256xf32>
    %144 = arith.addf %137, %143 : vector<4x256xf32>
    %145 = arith.addf %110, %144 : vector<4x256xf32>
    %c15_i32_36 = arith.constant 15 : i32
    %146 = arith.addi %0, %c15_i32_36 : i32
    %c0_i32_37 = arith.constant 0 : i32
    %147 = arith.addi %146, %c0_i32_37 : i32
    %148 = arith.index_cast %147 : i32 to index
    %149 = memref.load %arg1[%148] : memref<50xf32, #tpu.memory_space<smem>>
    %150 = vector.broadcast %149 : f32 to vector<4x256xf32>
    %151 = arith.mulf %150, %24 : vector<4x256xf32>
    %c15_i32_38 = arith.constant 15 : i32
    %152 = arith.addi %0, %c15_i32_38 : i32
    %c1_i32_39 = arith.constant 1 : i32
    %153 = arith.addi %152, %c1_i32_39 : i32
    %154 = arith.index_cast %153 : i32 to index
    %155 = memref.load %arg1[%154] : memref<50xf32, #tpu.memory_space<smem>>
    %156 = vector.broadcast %155 : f32 to vector<4x256xf32>
    %157 = arith.mulf %156, %29 : vector<4x256xf32>
    %158 = arith.addf %151, %157 : vector<4x256xf32>
    %c15_i32_40 = arith.constant 15 : i32
    %159 = arith.addi %0, %c15_i32_40 : i32
    %c2_i32_41 = arith.constant 2 : i32
    %160 = arith.addi %159, %c2_i32_41 : i32
    %161 = arith.index_cast %160 : i32 to index
    %162 = memref.load %arg1[%161] : memref<50xf32, #tpu.memory_space<smem>>
    %163 = vector.broadcast %162 : f32 to vector<4x256xf32>
    %164 = arith.mulf %163, %19 : vector<4x256xf32>
    %165 = arith.addf %158, %164 : vector<4x256xf32>
    %c15_i32_42 = arith.constant 15 : i32
    %166 = arith.addi %0, %c15_i32_42 : i32
    %c3_i32_43 = arith.constant 3 : i32
    %167 = arith.addi %166, %c3_i32_43 : i32
    %168 = arith.index_cast %167 : i32 to index
    %169 = memref.load %arg1[%168] : memref<50xf32, #tpu.memory_space<smem>>
    %170 = vector.broadcast %169 : f32 to vector<4x256xf32>
    %171 = arith.mulf %170, %34 : vector<4x256xf32>
    %172 = arith.addf %165, %171 : vector<4x256xf32>
    %c15_i32_44 = arith.constant 15 : i32
    %173 = arith.addi %0, %c15_i32_44 : i32
    %c4_i32_45 = arith.constant 4 : i32
    %174 = arith.addi %173, %c4_i32_45 : i32
    %175 = arith.index_cast %174 : i32 to index
    %176 = memref.load %arg1[%175] : memref<50xf32, #tpu.memory_space<smem>>
    %177 = vector.broadcast %176 : f32 to vector<4x256xf32>
    %178 = arith.mulf %177, %39 : vector<4x256xf32>
    %179 = arith.addf %172, %178 : vector<4x256xf32>
    %c16_i32_46 = arith.constant 16 : i32
    %180 = tpu.dynamic_rotate %179 by %c16_i32_46 dim 1 : vector<4x256xf32>, i32 -> vector<4x256xf32>
    %181 = arith.addf %145, %180 : vector<4x256xf32>
    %c20_i32 = arith.constant 20 : i32
    %182 = arith.addi %0, %c20_i32 : i32
    %c0_i32_47 = arith.constant 0 : i32
    %183 = arith.addi %182, %c0_i32_47 : i32
    %184 = arith.index_cast %183 : i32 to index
    %185 = memref.load %arg1[%184] : memref<50xf32, #tpu.memory_space<smem>>
    %186 = vector.broadcast %185 : f32 to vector<4x256xf32>
    %187 = arith.mulf %186, %24 : vector<4x256xf32>
    %c20_i32_48 = arith.constant 20 : i32
    %188 = arith.addi %0, %c20_i32_48 : i32
    %c1_i32_49 = arith.constant 1 : i32
    %189 = arith.addi %188, %c1_i32_49 : i32
    %190 = arith.index_cast %189 : i32 to index
    %191 = memref.load %arg1[%190] : memref<50xf32, #tpu.memory_space<smem>>
    %192 = vector.broadcast %191 : f32 to vector<4x256xf32>
    %193 = arith.mulf %192, %29 : vector<4x256xf32>
    %194 = arith.addf %187, %193 : vector<4x256xf32>
    %c20_i32_50 = arith.constant 20 : i32
    %195 = arith.addi %0, %c20_i32_50 : i32
    %c2_i32_51 = arith.constant 2 : i32
    %196 = arith.addi %195, %c2_i32_51 : i32
    %197 = arith.index_cast %196 : i32 to index
    %198 = memref.load %arg1[%197] : memref<50xf32, #tpu.memory_space<smem>>
    %199 = vector.broadcast %198 : f32 to vector<4x256xf32>
    %200 = arith.mulf %199, %19 : vector<4x256xf32>
    %201 = arith.addf %194, %200 : vector<4x256xf32>
    %c20_i32_52 = arith.constant 20 : i32
    %202 = arith.addi %0, %c20_i32_52 : i32
    %c3_i32_53 = arith.constant 3 : i32
    %203 = arith.addi %202, %c3_i32_53 : i32
    %204 = arith.index_cast %203 : i32 to index
    %205 = memref.load %arg1[%204] : memref<50xf32, #tpu.memory_space<smem>>
    %206 = vector.broadcast %205 : f32 to vector<4x256xf32>
    %207 = arith.mulf %206, %34 : vector<4x256xf32>
    %208 = arith.addf %201, %207 : vector<4x256xf32>
    %c20_i32_54 = arith.constant 20 : i32
    %209 = arith.addi %0, %c20_i32_54 : i32
    %c4_i32_55 = arith.constant 4 : i32
    %210 = arith.addi %209, %c4_i32_55 : i32
    %211 = arith.index_cast %210 : i32 to index
    %212 = memref.load %arg1[%211] : memref<50xf32, #tpu.memory_space<smem>>
    %213 = vector.broadcast %212 : f32 to vector<4x256xf32>
    %214 = arith.mulf %213, %39 : vector<4x256xf32>
    %215 = arith.addf %208, %214 : vector<4x256xf32>
    %c32_i32 = arith.constant 32 : i32
    %216 = tpu.dynamic_rotate %215 by %c32_i32 dim 1 : vector<4x256xf32>, i32 -> vector<4x256xf32>
    %217 = arith.addf %181, %216 : vector<4x256xf32>
    %c0_56 = arith.constant 0 : index
    %c0_57 = arith.constant 0 : index
    %c0_58 = arith.constant 0 : index
    %218 = vector.load %arg4[%c0_56, %c0_57, %c0_58] : memref<1x4x256xf32, #tpu.memory_space<vmem>>, vector<1x4x256xf32>
    %219 = vector.shape_cast %218 : vector<1x4x256xf32> to vector<4x256xf32>
    %220 = arith.subf %217, %219 : vector<4x256xf32>
    %c14_i32_59 = arith.constant 14 : i32
    %221 = tpu.dynamic_rotate %220 by %c14_i32_59 dim 1 : vector<4x256xf32>, i32 -> vector<4x256xf32>
    %c254_i32_60 = arith.constant 254 : i32
    %222 = tpu.dynamic_rotate %220 by %c254_i32_60 dim 1 : vector<4x256xf32>, i32 -> vector<4x256xf32>
    %c14_i32_61 = arith.constant 14 : i32
    %223 = vector.broadcast %c14_i32_61 : i32 to vector<4x256xi32>
    %224 = arith.cmpi sge, %17, %223 : vector<4x256xi32>
    %225 = arith.select %224, %221, %222 : vector<4x256xi1>, vector<4x256xf32>
    %c15_i32_62 = arith.constant 15 : i32
    %226 = tpu.dynamic_rotate %220 by %c15_i32_62 dim 1 : vector<4x256xf32>, i32 -> vector<4x256xf32>
    %c255_i32_63 = arith.constant 255 : i32
    %227 = tpu.dynamic_rotate %220 by %c255_i32_63 dim 1 : vector<4x256xf32>, i32 -> vector<4x256xf32>
    %c15_i32_64 = arith.constant 15 : i32
    %228 = vector.broadcast %c15_i32_64 : i32 to vector<4x256xi32>
    %229 = arith.cmpi sge, %17, %228 : vector<4x256xi32>
    %230 = arith.select %229, %226, %227 : vector<4x256xi1>, vector<4x256xf32>
    %c1_i32_65 = arith.constant 1 : i32
    %231 = tpu.dynamic_rotate %220 by %c1_i32_65 dim 1 : vector<4x256xf32>, i32 -> vector<4x256xf32>
    %c241_i32_66 = arith.constant 241 : i32
    %232 = tpu.dynamic_rotate %220 by %c241_i32_66 dim 1 : vector<4x256xf32>, i32 -> vector<4x256xf32>
    %c1_i32_67 = arith.constant 1 : i32
    %233 = vector.broadcast %c1_i32_67 : i32 to vector<4x256xi32>
    %234 = arith.cmpi sge, %17, %233 : vector<4x256xi32>
    %235 = arith.select %234, %231, %232 : vector<4x256xi1>, vector<4x256xf32>
    %c2_i32_68 = arith.constant 2 : i32
    %236 = tpu.dynamic_rotate %220 by %c2_i32_68 dim 1 : vector<4x256xf32>, i32 -> vector<4x256xf32>
    %c242_i32_69 = arith.constant 242 : i32
    %237 = tpu.dynamic_rotate %220 by %c242_i32_69 dim 1 : vector<4x256xf32>, i32 -> vector<4x256xf32>
    %c2_i32_70 = arith.constant 2 : i32
    %238 = vector.broadcast %c2_i32_70 : i32 to vector<4x256xi32>
    %239 = arith.cmpi sge, %17, %238 : vector<4x256xi32>
    %240 = arith.select %239, %236, %237 : vector<4x256xi1>, vector<4x256xf32>
    %c0_i32_71 = arith.constant 0 : i32
    %241 = arith.addi %0, %c0_i32_71 : i32
    %c0_i32_72 = arith.constant 0 : i32
    %242 = arith.addi %241, %c0_i32_72 : i32
    %243 = arith.index_cast %242 : i32 to index
    %244 = memref.load %arg2[%243] : memref<50xf32, #tpu.memory_space<smem>>
    %245 = vector.broadcast %244 : f32 to vector<4x256xf32>
    %246 = arith.mulf %245, %225 : vector<4x256xf32>
    %c0_i32_73 = arith.constant 0 : i32
    %247 = arith.addi %0, %c0_i32_73 : i32
    %c1_i32_74 = arith.constant 1 : i32
    %248 = arith.addi %247, %c1_i32_74 : i32
    %249 = arith.index_cast %248 : i32 to index
    %250 = memref.load %arg2[%249] : memref<50xf32, #tpu.memory_space<smem>>
    %251 = vector.broadcast %250 : f32 to vector<4x256xf32>
    %252 = arith.mulf %251, %230 : vector<4x256xf32>
    %253 = arith.addf %246, %252 : vector<4x256xf32>
    %c0_i32_75 = arith.constant 0 : i32
    %254 = arith.addi %0, %c0_i32_75 : i32
    %c2_i32_76 = arith.constant 2 : i32
    %255 = arith.addi %254, %c2_i32_76 : i32
    %256 = arith.index_cast %255 : i32 to index
    %257 = memref.load %arg2[%256] : memref<50xf32, #tpu.memory_space<smem>>
    %258 = vector.broadcast %257 : f32 to vector<4x256xf32>
    %259 = arith.mulf %258, %220 : vector<4x256xf32>
    %260 = arith.addf %253, %259 : vector<4x256xf32>
    %c0_i32_77 = arith.constant 0 : i32
    %261 = arith.addi %0, %c0_i32_77 : i32
    %c3_i32_78 = arith.constant 3 : i32
    %262 = arith.addi %261, %c3_i32_78 : i32
    %263 = arith.index_cast %262 : i32 to index
    %264 = memref.load %arg2[%263] : memref<50xf32, #tpu.memory_space<smem>>
    %265 = vector.broadcast %264 : f32 to vector<4x256xf32>
    %266 = arith.mulf %265, %235 : vector<4x256xf32>
    %267 = arith.addf %260, %266 : vector<4x256xf32>
    %c0_i32_79 = arith.constant 0 : i32
    %268 = arith.addi %0, %c0_i32_79 : i32
    %c4_i32_80 = arith.constant 4 : i32
    %269 = arith.addi %268, %c4_i32_80 : i32
    %270 = arith.index_cast %269 : i32 to index
    %271 = memref.load %arg2[%270] : memref<50xf32, #tpu.memory_space<smem>>
    %272 = vector.broadcast %271 : f32 to vector<4x256xf32>
    %273 = arith.mulf %272, %240 : vector<4x256xf32>
    %274 = arith.addf %267, %273 : vector<4x256xf32>
    %c224_i32_81 = arith.constant 224 : i32
    %275 = tpu.dynamic_rotate %274 by %c224_i32_81 dim 1 : vector<4x256xf32>, i32 -> vector<4x256xf32>
    %c5_i32_82 = arith.constant 5 : i32
    %276 = arith.addi %0, %c5_i32_82 : i32
    %c0_i32_83 = arith.constant 0 : i32
    %277 = arith.addi %276, %c0_i32_83 : i32
    %278 = arith.index_cast %277 : i32 to index
    %279 = memref.load %arg2[%278] : memref<50xf32, #tpu.memory_space<smem>>
    %280 = vector.broadcast %279 : f32 to vector<4x256xf32>
    %281 = arith.mulf %280, %225 : vector<4x256xf32>
    %c5_i32_84 = arith.constant 5 : i32
    %282 = arith.addi %0, %c5_i32_84 : i32
    %c1_i32_85 = arith.constant 1 : i32
    %283 = arith.addi %282, %c1_i32_85 : i32
    %284 = arith.index_cast %283 : i32 to index
    %285 = memref.load %arg2[%284] : memref<50xf32, #tpu.memory_space<smem>>
    %286 = vector.broadcast %285 : f32 to vector<4x256xf32>
    %287 = arith.mulf %286, %230 : vector<4x256xf32>
    %288 = arith.addf %281, %287 : vector<4x256xf32>
    %c5_i32_86 = arith.constant 5 : i32
    %289 = arith.addi %0, %c5_i32_86 : i32
    %c2_i32_87 = arith.constant 2 : i32
    %290 = arith.addi %289, %c2_i32_87 : i32
    %291 = arith.index_cast %290 : i32 to index
    %292 = memref.load %arg2[%291] : memref<50xf32, #tpu.memory_space<smem>>
    %293 = vector.broadcast %292 : f32 to vector<4x256xf32>
    %294 = arith.mulf %293, %220 : vector<4x256xf32>
    %295 = arith.addf %288, %294 : vector<4x256xf32>
    %c5_i32_88 = arith.constant 5 : i32
    %296 = arith.addi %0, %c5_i32_88 : i32
    %c3_i32_89 = arith.constant 3 : i32
    %297 = arith.addi %296, %c3_i32_89 : i32
    %298 = arith.index_cast %297 : i32 to index
    %299 = memref.load %arg2[%298] : memref<50xf32, #tpu.memory_space<smem>>
    %300 = vector.broadcast %299 : f32 to vector<4x256xf32>
    %301 = arith.mulf %300, %235 : vector<4x256xf32>
    %302 = arith.addf %295, %301 : vector<4x256xf32>
    %c5_i32_90 = arith.constant 5 : i32
    %303 = arith.addi %0, %c5_i32_90 : i32
    %c4_i32_91 = arith.constant 4 : i32
    %304 = arith.addi %303, %c4_i32_91 : i32
    %305 = arith.index_cast %304 : i32 to index
    %306 = memref.load %arg2[%305] : memref<50xf32, #tpu.memory_space<smem>>
    %307 = vector.broadcast %306 : f32 to vector<4x256xf32>
    %308 = arith.mulf %307, %240 : vector<4x256xf32>
    %309 = arith.addf %302, %308 : vector<4x256xf32>
    %c240_i32_92 = arith.constant 240 : i32
    %310 = tpu.dynamic_rotate %309 by %c240_i32_92 dim 1 : vector<4x256xf32>, i32 -> vector<4x256xf32>
    %311 = arith.addf %275, %310 : vector<4x256xf32>
    %c10_i32_93 = arith.constant 10 : i32
    %312 = arith.addi %0, %c10_i32_93 : i32
    %c0_i32_94 = arith.constant 0 : i32
    %313 = arith.addi %312, %c0_i32_94 : i32
    %314 = arith.index_cast %313 : i32 to index
    %315 = memref.load %arg2[%314] : memref<50xf32, #tpu.memory_space<smem>>
    %316 = vector.broadcast %315 : f32 to vector<4x256xf32>
    %317 = arith.mulf %316, %225 : vector<4x256xf32>
    %c10_i32_95 = arith.constant 10 : i32
    %318 = arith.addi %0, %c10_i32_95 : i32
    %c1_i32_96 = arith.constant 1 : i32
    %319 = arith.addi %318, %c1_i32_96 : i32
    %320 = arith.index_cast %319 : i32 to index
    %321 = memref.load %arg2[%320] : memref<50xf32, #tpu.memory_space<smem>>
    %322 = vector.broadcast %321 : f32 to vector<4x256xf32>
    %323 = arith.mulf %322, %230 : vector<4x256xf32>
    %324 = arith.addf %317, %323 : vector<4x256xf32>
    %c10_i32_97 = arith.constant 10 : i32
    %325 = arith.addi %0, %c10_i32_97 : i32
    %c2_i32_98 = arith.constant 2 : i32
    %326 = arith.addi %325, %c2_i32_98 : i32
    %327 = arith.index_cast %326 : i32 to index
    %328 = memref.load %arg2[%327] : memref<50xf32, #tpu.memory_space<smem>>
    %329 = vector.broadcast %328 : f32 to vector<4x256xf32>
    %330 = arith.mulf %329, %220 : vector<4x256xf32>
    %331 = arith.addf %324, %330 : vector<4x256xf32>
    %c10_i32_99 = arith.constant 10 : i32
    %332 = arith.addi %0, %c10_i32_99 : i32
    %c3_i32_100 = arith.constant 3 : i32
    %333 = arith.addi %332, %c3_i32_100 : i32
    %334 = arith.index_cast %333 : i32 to index
    %335 = memref.load %arg2[%334] : memref<50xf32, #tpu.memory_space<smem>>
    %336 = vector.broadcast %335 : f32 to vector<4x256xf32>
    %337 = arith.mulf %336, %235 : vector<4x256xf32>
    %338 = arith.addf %331, %337 : vector<4x256xf32>
    %c10_i32_101 = arith.constant 10 : i32
    %339 = arith.addi %0, %c10_i32_101 : i32
    %c4_i32_102 = arith.constant 4 : i32
    %340 = arith.addi %339, %c4_i32_102 : i32
    %341 = arith.index_cast %340 : i32 to index
    %342 = memref.load %arg2[%341] : memref<50xf32, #tpu.memory_space<smem>>
    %343 = vector.broadcast %342 : f32 to vector<4x256xf32>
    %344 = arith.mulf %343, %240 : vector<4x256xf32>
    %345 = arith.addf %338, %344 : vector<4x256xf32>
    %346 = arith.addf %311, %345 : vector<4x256xf32>
    %c15_i32_103 = arith.constant 15 : i32
    %347 = arith.addi %0, %c15_i32_103 : i32
    %c0_i32_104 = arith.constant 0 : i32
    %348 = arith.addi %347, %c0_i32_104 : i32
    %349 = arith.index_cast %348 : i32 to index
    %350 = memref.load %arg2[%349] : memref<50xf32, #tpu.memory_space<smem>>
    %351 = vector.broadcast %350 : f32 to vector<4x256xf32>
    %352 = arith.mulf %351, %225 : vector<4x256xf32>
    %c15_i32_105 = arith.constant 15 : i32
    %353 = arith.addi %0, %c15_i32_105 : i32
    %c1_i32_106 = arith.constant 1 : i32
    %354 = arith.addi %353, %c1_i32_106 : i32
    %355 = arith.index_cast %354 : i32 to index
    %356 = memref.load %arg2[%355] : memref<50xf32, #tpu.memory_space<smem>>
    %357 = vector.broadcast %356 : f32 to vector<4x256xf32>
    %358 = arith.mulf %357, %230 : vector<4x256xf32>
    %359 = arith.addf %352, %358 : vector<4x256xf32>
    %c15_i32_107 = arith.constant 15 : i32
    %360 = arith.addi %0, %c15_i32_107 : i32
    %c2_i32_108 = arith.constant 2 : i32
    %361 = arith.addi %360, %c2_i32_108 : i32
    %362 = arith.index_cast %361 : i32 to index
    %363 = memref.load %arg2[%362] : memref<50xf32, #tpu.memory_space<smem>>
    %364 = vector.broadcast %363 : f32 to vector<4x256xf32>
    %365 = arith.mulf %364, %220 : vector<4x256xf32>
    %366 = arith.addf %359, %365 : vector<4x256xf32>
    %c15_i32_109 = arith.constant 15 : i32
    %367 = arith.addi %0, %c15_i32_109 : i32
    %c3_i32_110 = arith.constant 3 : i32
    %368 = arith.addi %367, %c3_i32_110 : i32
    %369 = arith.index_cast %368 : i32 to index
    %370 = memref.load %arg2[%369] : memref<50xf32, #tpu.memory_space<smem>>
    %371 = vector.broadcast %370 : f32 to vector<4x256xf32>
    %372 = arith.mulf %371, %235 : vector<4x256xf32>
    %373 = arith.addf %366, %372 : vector<4x256xf32>
    %c15_i32_111 = arith.constant 15 : i32
    %374 = arith.addi %0, %c15_i32_111 : i32
    %c4_i32_112 = arith.constant 4 : i32
    %375 = arith.addi %374, %c4_i32_112 : i32
    %376 = arith.index_cast %375 : i32 to index
    %377 = memref.load %arg2[%376] : memref<50xf32, #tpu.memory_space<smem>>
    %378 = vector.broadcast %377 : f32 to vector<4x256xf32>
    %379 = arith.mulf %378, %240 : vector<4x256xf32>
    %380 = arith.addf %373, %379 : vector<4x256xf32>
    %c16_i32_113 = arith.constant 16 : i32
    %381 = tpu.dynamic_rotate %380 by %c16_i32_113 dim 1 : vector<4x256xf32>, i32 -> vector<4x256xf32>
    %382 = arith.addf %346, %381 : vector<4x256xf32>
    %c20_i32_114 = arith.constant 20 : i32
    %383 = arith.addi %0, %c20_i32_114 : i32
    %c0_i32_115 = arith.constant 0 : i32
    %384 = arith.addi %383, %c0_i32_115 : i32
    %385 = arith.index_cast %384 : i32 to index
    %386 = memref.load %arg2[%385] : memref<50xf32, #tpu.memory_space<smem>>
    %387 = vector.broadcast %386 : f32 to vector<4x256xf32>
    %388 = arith.mulf %387, %225 : vector<4x256xf32>
    %c20_i32_116 = arith.constant 20 : i32
    %389 = arith.addi %0, %c20_i32_116 : i32
    %c1_i32_117 = arith.constant 1 : i32
    %390 = arith.addi %389, %c1_i32_117 : i32
    %391 = arith.index_cast %390 : i32 to index
    %392 = memref.load %arg2[%391] : memref<50xf32, #tpu.memory_space<smem>>
    %393 = vector.broadcast %392 : f32 to vector<4x256xf32>
    %394 = arith.mulf %393, %230 : vector<4x256xf32>
    %395 = arith.addf %388, %394 : vector<4x256xf32>
    %c20_i32_118 = arith.constant 20 : i32
    %396 = arith.addi %0, %c20_i32_118 : i32
    %c2_i32_119 = arith.constant 2 : i32
    %397 = arith.addi %396, %c2_i32_119 : i32
    %398 = arith.index_cast %397 : i32 to index
    %399 = memref.load %arg2[%398] : memref<50xf32, #tpu.memory_space<smem>>
    %400 = vector.broadcast %399 : f32 to vector<4x256xf32>
    %401 = arith.mulf %400, %220 : vector<4x256xf32>
    %402 = arith.addf %395, %401 : vector<4x256xf32>
    %c20_i32_120 = arith.constant 20 : i32
    %403 = arith.addi %0, %c20_i32_120 : i32
    %c3_i32_121 = arith.constant 3 : i32
    %404 = arith.addi %403, %c3_i32_121 : i32
    %405 = arith.index_cast %404 : i32 to index
    %406 = memref.load %arg2[%405] : memref<50xf32, #tpu.memory_space<smem>>
    %407 = vector.broadcast %406 : f32 to vector<4x256xf32>
    %408 = arith.mulf %407, %235 : vector<4x256xf32>
    %409 = arith.addf %402, %408 : vector<4x256xf32>
    %c20_i32_122 = arith.constant 20 : i32
    %410 = arith.addi %0, %c20_i32_122 : i32
    %c4_i32_123 = arith.constant 4 : i32
    %411 = arith.addi %410, %c4_i32_123 : i32
    %412 = arith.index_cast %411 : i32 to index
    %413 = memref.load %arg2[%412] : memref<50xf32, #tpu.memory_space<smem>>
    %414 = vector.broadcast %413 : f32 to vector<4x256xf32>
    %415 = arith.mulf %414, %240 : vector<4x256xf32>
    %416 = arith.addf %409, %415 : vector<4x256xf32>
    %c32_i32_124 = arith.constant 32 : i32
    %417 = tpu.dynamic_rotate %416 by %c32_i32_124 dim 1 : vector<4x256xf32>, i32 -> vector<4x256xf32>
    %418 = arith.addf %382, %417 : vector<4x256xf32>
    %c0_125 = arith.constant 0 : index
    %c0_126 = arith.constant 0 : index
    %c0_127 = arith.constant 0 : index
    %419 = vector.load %arg5[%c0_125, %c0_126, %c0_127] : memref<1x4x256xf32, #tpu.memory_space<vmem>>, vector<1x4x256xf32>
    %420 = vector.shape_cast %419 : vector<1x4x256xf32> to vector<4x256xf32>
    %421 = vector.shape_cast %418 : vector<4x256xf32> to vector<1x4x256xf32>
    tpu.vector_store %arg5[%c0_125, %c0_126, %c0_127], %421 {strides = array<i32>} : memref<1x4x256xf32, #tpu.memory_space<vmem>>, vector<1x4x256xf32>,
    return
  }
  func.func @transform_0(%arg0: i32) -> i32 {
    %c0_i32 = arith.constant 0 : i32
    %c0_i32_0 = arith.constant 0 : i32
    return %c0_i32 : i32
  }
  func.func @transform_1(%arg0: i32) -> i32 {
    %c0_i32 = arith.constant 0 : i32
    %c0_i32_0 = arith.constant 0 : i32
    return %c0_i32 : i32
  }
  func.func @transform_2(%arg0: i32) -> (i32, i32, i32) {
    %c0_i32 = arith.constant 0 : i32
    %c0_i32_0 = arith.constant 0 : i32
    %c0_i32_1 = arith.constant 0 : i32
    return %arg0, %c0_i32, %c0_i32_0 : i32, i32, i32
  }
  func.func @transform_3(%arg0: i32) -> (i32, i32, i32) {
    %c0_i32 = arith.constant 0 : i32
    %c0_i32_0 = arith.constant 0 : i32
    %c0_i32_1 = arith.constant 0 : i32
    return %arg0, %c0_i32, %c0_i32_0 : i32, i32, i32
  }
  func.func @transform_4(%arg0: i32) -> (i32, i32, i32) {
    %c0_i32 = arith.constant 0 : i32
    %c0_i32_0 = arith.constant 0 : i32
    %c0_i32_1 = arith.constant 0 : i32
    return %arg0, %c0_i32, %c0_i32_0 : i32, i32, i32
  }
}

</mosaic_0001>

<bundles_post_ra>
// kernel: grad_data_fitting.1
= control target key start
LH: loop header
LB: loop body
LE: loop exit
PB: predicated region body
PF: predicated region fallthrough
CT: control target
= control target key end

     0   :  { %9 = vsyncpa [#allocation3], 0  ;;  %s1796_s0 = inlined_call_operand.vmem [shape: f32[50], index: 0, kind: input, shape index: {}]   ;;  %s1797_s1 = inlined_call_operand.vmem [shape: f32[50], index: 1, kind: input, shape index: {}]   ;;  %s1798_s2 = inlined_call_operand.vmem [shape: f32[2,4,256], index: 2, kind: input, shape index: {}]   ;;  %s1799_s3 = inlined_call_operand.vmem [shape: f32[2,4,256], index: 3, kind: input, shape index: {}]   ;;  %s1800_s4 = inlined_call_operand.vmem [shape: f32[2,4,256], index: 4, kind: output, shape index: {}]  }
   0x1   :  { %10 = vsyncpa [#allocation5], 0  ;;  %s1035_s15 = smov 0  }
   0x2 LB: > { %s1041_s16 = sadd.s32 4294967295, %s994_s15   ;;  %p889_p0 = scmp.ge.s32.totalorder %s994_s15, 1  ;;  %s994_s15 = sphi %s1035_s15, %s16_s15  }
   0x3   : > { %p141_p1 = scmp.lt.s32.totalorder %s994_s15, 3  ;;  %s154_s19 = sshll.u32 %s1796_s0, 4  ;;  %s155_s19 = int_to_ptr.vmem [resolvable:$true] %s154_s19 }
   0x4   : > { %p1801_p3 = scmp.eq.s32.totalorder %s1041_s16, 0  ;;  %s165_s23 = sshll.u32 %s1797_s1, 4  ;;  %s166_s23 = int_to_ptr.vmem [resolvable:$true] %s165_s23 }
   0x5   : > { %p1048_p2 = pnand %p889_p0, %p141_p1  ;;  %s950_s25 = scalar_lea.vmem %s155_s19, 16 }
   0x6   : > { %p951_p6 = scmp.ne.s32.totalorder %s155_s19, %s950_s25  ;;  %p958_p10 = scmp.lt.s32.totalorder %s155_s19, %s155_s19 }
   0x7   : > { %s1849_s20 = scalar_select %p1048_p2, 1, 0 }
   0x8   : > { %p915_p4 = pneg %p1048_p2  ;;  %p959_p11 = scmp.lt.s32.totalorder %s950_s25, %s950_s25 }
   0xa   : > { %p1060_p5 = pnand %p1801_p3, %p915_p4  ;;  %p960_p12 = por %p959_p11, %p958_p10 }
   0xc   : > { %p952_p7 = pneg %p1060_p5 }
   0xe   : > { %p953_p8 = pnand %p952_p7, %p951_p6 }
  0x10   : > { %p954_p9 = pneg %p953_p8 }
  0x12   : > { %p961_p13 = pnand %p960_p12, %p954_p9 }
  0x14   : > { %964 = shalt.err (!%p961_p13)
}
  0x15   : > { %s996_s26 = smov [#allocation2]   ;;  %s965_s27 = scalar_lea.vmem %s166_s23, 16 }
  0x16   : > { %918 = dma.vmem_to_smem (!%p1060_p5), %s155_s19, 16, %s996_s26, [#allocation3]  }
  0x17   : > { %p966_p0 = scmp.ne.s32.totalorder %s166_s23, %s965_s27  ;;  %p973_p3 = scmp.lt.s32.totalorder %s166_s23, %s166_s23 }
  0x18   : > { %p974_p2 = scmp.lt.s32.totalorder %s965_s27, %s965_s27 }
  0x19   : > { %p968_p1 = pnand %p966_p0, %p952_p7 }
  0x1a   : > { %p975_p6 = por %p974_p2, %p973_p3 }
  0x1b   : > { %p969_p4 = pneg %p968_p1 }
  0x1d   : > { %p976_p8 = pnand %p975_p6, %p969_p4 }
  0x1f   : > { %979 = shalt.err (!%p976_p8)
}
  0x20   : > { %s997_s28 = smov [#allocation4]   ;;  %p1851_p9 = scmp.ne.s32.totalorder %s1849_s20, 0 }
  0x21   : > { %921 = dma.vmem_to_smem (!%p1060_p5), %s166_s23, 16, %s997_s28, [#allocation5]  }
  0x22   : > { %194 = sbr.rel (%p1851_p9) target bundleno = 618 (0x26a), region = 36  ;;  %p1852_p10 = scmp.eq.s32.totalorder (!%p1851_p9), %s1041_s16, 0 }
  0x29   : > { %985 = dma.done.wait (%p1852_p10), [#allocation3], 16   ;;  %p1853_p11 = pmov %p1852_p10 }
  0x2a   : > { %p1854_p7 = pmov %p1852_p10 }
  0x2b   : > { %987 = vsyncadd (%p1853_p11), [#allocation3], 4294967280 }
  0x2c   : > { %989 = dma.done.wait (%p1854_p7), [#allocation5], 16   ;;  %p1855_p2 = pmov %p1854_p7 }
  0x2e   : > { %991 = vsyncadd (%p1855_p2), [#allocation5], 4294967280 }
  0x2f   : > { %204 = sfence }
  0x30   : > { %p230_p3 = scmp.lt.s32.totalorder %s1041_s16, 1  ;;  %s1825_s8 = smov 126   ;;  %v246_v2 = vlaneseq }
  0x31   : > { %s1833_s9 = smov 14   ;;  %s1823_s10 = smov 15  }
  0x32   : > { %s231_s29 = scalar_select %p230_p3, %s1041_s16, 1  ;;  %v1145_v3 = vand.u32 127, %v246_v2 }
  0x33   : > { %s1821_s11 = smov 127   ;;  %s1817_s12 = smov 1  }
  0x34   : > { %s1082_s30 = sshll.u32 %s231_s29, 3  ;;  %s1814_s13 = smov 113   ;;  %v248_v4 = vadd.s32 128, %v1145_v3  ;;  %v1181_v7 = vand.u32 15, %v1145_v3  ;;  %vm288_vm0 = vcmp.lt.s32.totalorder %v1145_v3, 126  ;;  %vm299_vm1 = vcmp.lt.s32.totalorder %v1145_v3, 15 }
  0x35   : > { %s234_s7 = scalar_lea.vmem %s1798_s2, %s1082_s30  ;;  %s1811_s14 = smov 2   ;;  %vm281_vm2 = vcmp.lt.s32.totalorder %v1145_v3, 14  ;;  %vm306_vm5 = vcmp.lt.s32.totalorder %v1145_v3, 127  ;;  %vm324_vm8 = vcmp.lt.s32.totalorder %v1145_v3, 113  ;;  %vm317_vm9 = vcmp.lt.s32.totalorder %v1145_v3, 1 }
  0x36   : > { %v1088_v0 = vld [vmem:[%s234_s7] sm:$0xff]  ;;  %s1807_s17 = smov 114   ;;  %s1117_s18 = smul.u32 25, %s1041_s16  ;;  %v1191_v8 = vand.u32 15, %v248_v4  ;;  %vm291_vm3 = vcmp.ge.s32.totalorder %v1181_v7, 14  ;;  %vm309_vm6 = vcmp.ge.s32.totalorder %v1181_v7, 15 }
  0x37   : > { %284 = vrot.lane.b32.xlu1 %v1088_v0, %s1825_s8  ;;  %277 = vrot.lane.b32.xlu0 %v1088_v0, %s1833_s9  ;;  %v275_v1 = vcombine.high %v1088_v0, %v1088_v0  ;;  %vm327_vm10 = vcmp.ge.s32.totalorder %v1181_v7, 1  ;;  %vm335_vm12 = vcmp.lt.s32.totalorder %v1145_v3, 2  ;;  %vm1838_vm13 = vcmp.lt.s32.totalorder %v1145_v3, 114 }
  0x38   : > { %s1806_s19 = sadd.s32 5, %s1117_s18  ;;  %s1804_s20 = sadd.s32 10, %s1117_s18  ;;  %vm292_vm4 = vcmp.ge.s32.totalorder %v1191_v8, 14  ;;  %vm310_vm7 = vcmp.ge.s32.totalorder %v1191_v8, 15  ;;  %vm328_vm11 = vcmp.ge.s32.totalorder %v1191_v8, 1  ;;  %vm1837_vm14 = vcmp.ge.s32.totalorder %v1181_v7, 2 }
  0x39   : > { %s1122_s16 = sld [smem:[#allocation2 + %s1117_s18]]  ;;  %s1803_s21 = sadd.s32 15, %s1117_s18  ;;  %vm1836_vm15 = vcmp.ge.s32.totalorder %v1191_v8, 2 }
  0x3a   : > { %s1127_s22 = sld [smem:[#allocation2 + %s1806_s19]]  ;;  %s1805_s23 = sadd.s32 20, %s1117_s18 }
  0x3b   : > { %295 = vrot.lane.b32.xlu0 %v1088_v0, %s1823_s10  ;;  %286 = vrot.lane.b32.xlu1 %v275_v1, %s1825_s8  ;;  %s1132_s24 = sld [smem:[#allocation2 + %s1804_s20]]  ;;  %s1809_s25 = sadd.s32 1, %s1117_s18 }
  0x3c   : > { %s1137_s26 = sld [smem:[#allocation2 + %s1803_s21]]  ;;  %s1810_s27 = sadd.s32 6, %s1117_s18 }
  0x3d   : > { %s1142_s28 = sld [smem:[#allocation2 + %s1805_s23]]  ;;  %s1813_s29 = sadd.s32 11, %s1117_s18 }
  0x3e   : > { %s1149_s5 = sld [smem:[#allocation2 + %s1809_s25]]  ;;  %s1816_s6 = sadd.s32 16, %s1117_s18 }
  0x3f   : > { %297 = vrot.lane.b32.xlu1 %v275_v1, %s1823_s10  ;;  %279 = vrot.lane.b32.xlu0 %v275_v1, %s1833_s9  ;;  %s1154_s7 = sld [smem:[#allocation2 + %s1810_s27]]  ;;  %s1819_s21 = sadd.s32 2, %s1117_s18  ;;  %v350_v11 = vstv %s1122_s16 }
  0x40   : > { %s1159_s20 = sld [smem:[#allocation2 + %s1813_s29]]  ;;  %s1820_s23 = sadd.s32 7, %s1117_s18  ;;  %v392_v12 = vstv %s1127_s22 }
  0x41   : > { %s1164_s19 = sld [smem:[#allocation2 + %s1816_s6]]  ;;  %s1827_s25 = sadd.s32 13, %s1117_s18  ;;  %v436_v13 = vstv %s1132_s24 }
  0x42   : > { %s1171_s27 = sld [smem:[#allocation2 + %s1819_s21]]  ;;  %s1831_s29 = sadd.s32 17, %s1117_s18  ;;  %v473_v16 = vstv %s1137_s26 }
  0x43   : > { %304 = vrot.lane.b32.xlu1 %v275_v1, %s1821_s11  ;;  %302 = vrot.lane.b32.xlu0 %v1088_v0, %s1821_s11  ;;  %s1829_s6 = sadd.s32 12, %s1117_s18  ;;  %s1189_s21 = sld [smem:[#allocation2 + %s1827_s25]]  ;;  %v517_v17 = vstv %s1142_s28 }
  0x44   : > { %s1196_s11 = sld [smem:[#allocation2 + %s1831_s29]]  ;;  %s1835_s25 = sadd.s32 4, %s1117_s18  ;;  %v355_v19 = vstv %s1149_s5 }
  0x45   : > { %s1204_s8 = sld [smem:[#allocation2 + %s1829_s6]]  ;;  %s411_s6 = sadd.s32 8, %s1117_s18  ;;  %v397_v21 = vstv %s1154_s7 }
  0x46   : > { %s1237_s29 = sld [smem:[#allocation2 + %s411_s6]]  ;;  %s462_s24 = sadd.s32 14, %s1117_s18  ;;  %v441_v22 = vstv %s1159_s20 }
  0x47   : > { %315 = vrot.lane.b32.xlu1 %v275_v1, %s1817_s12  ;;  %313 = vrot.lane.b32.xlu0 %v1088_v0, %s1817_s12  ;;  %v478_v23 = vstv %s1164_s19  ;;  %s1842_s19 = smov 16   ;;  %s1840_s16 = smov 32  }
  0x48   : > { %v362_v14 = vstv %s1171_s27  ;;  %s1858_s26 = smov 14   ;;  %s1859_s28 = smov 126  }
  0x49   : > { %v457_v27 = vstv %s1189_s21  ;;  %v1259_v28 = vmul.f32 %v362_v14, %v1088_v0  ;;  %s1861_s5 = smov 127   ;;  %s1862_s7 = smov 1  }
  0x4a   : > { %v485_v30 = vstv %s1196_s11  ;;  %s1848_s11 = sadd.s32 24, %s1117_s18  ;;  %s1868_s22 = sadd.s32 17, %s1117_s18 }
  0x4b   : > { %322 = vrot.lane.b32.xlu1 %v275_v1, %s1814_s13  ;;  %320 = vrot.lane.b32.xlu0 %v1088_v0, %s1814_s13  ;;  %s1830_s13 = sadd.s32 22, %s1117_s18  ;;  %v448_v32 = vstv %s1204_s8  ;;  %v1300_v46 = vmul.f32 %v485_v30, %v1088_v0  ;;  %v365_v47 = vcombine.high %v1259_v28, %v1259_v28  ;;  %s536_s8 = sadd.s32 23, %s1117_s18 }
  0x4c   : > { %s1200_s10 = sld [smem:[#allocation2 + %s1830_s13]]  ;;  %s418_s13 = sadd.s32 9, %s1117_s18  ;;  %v1309_v50 = vmul.f32 %v448_v32, %v1088_v0  ;;  %v413_v58 = vstv %s1237_s29 }
  0x4d   : > { %s1246_s27 = sld [smem:[#allocation2 + %s418_s13]]  ;;  %v488_v63 = vcombine.high %v1300_v46, %v1300_v46  ;;  %s1860_s29 = smov 15  }
  0x4f   : > { %333 = vrot.lane.b32.xlu1 %v275_v1, %s1811_s14  ;;  %331 = vrot.lane.b32.xlu0 %v1088_v0, %s1811_s14  ;;  %s1175_s14 = sld [smem:[#allocation2 + %s1820_s23]]  ;;  %s1832_s23 = sadd.s32 3, %s1117_s18 }
  0x52   : > { %v529_v31 = vstv %s1200_s10  ;;  %s1388_s10 = sld [smem:[#allocation2 + %s536_s8]] }
  0x53   : > { %340 = vrot.lane.b32.xlu1 %v275_v1, %s1807_s17  ;;  %338 = vrot.lane.b32.xlu0 %v1088_v0, %s1807_s17  ;;  %s1828_s17 = sadd.s32 21, %s1117_s18  ;;  %v1306_v49 = vmul.f32 %v529_v31, %v1088_v0  ;;  %v420_v59 = vstv %s1246_s27  ;;  %s1863_s27 = smov 113  }
  0x54   : > { %s1185_s12 = sld [smem:[#allocation2 + %s1828_s17]] }
  0x55   : > { %s1213_s17 = sld [smem:[#allocation2 + %s1832_s23]]  ;;  %v404_v20 = vstv %s1175_s14  ;;  %s1857_s14 = sadd.s32 19, %s1117_s18  ;;  %v532_v4 = vcombine.high %v1306_v49, %v1306_v49 }
  0x56   : > { %s1228_s23 = sld [smem:[#allocation2 + %s1835_s25]]  ;;  %s1856_s25 = sadd.s32 18, %s1117_s18  ;;  %v1267_v29 = vmul.f32 %v404_v20, %v1088_v0 }
  0x57   : > { %s1250_s9 = sld [smem:[#allocation2 + %s1856_s25]] }
  0x58   : > { %s1263_s20 = sld [smem:[#allocation2 + %s1857_s14]]  ;;  %v407_v57 = vcombine.high %v1267_v29, %v1267_v29  ;;  %s1864_s14 = smov 2  }
  0x59   : > { %s1274_s25 = sld [smem:[#allocation2 + %s462_s24]] }
  0x5a   : > { %v522_v24 = vstv %s1185_s12  ;;  %s1408_s12 = sld [smem:[#allocation2 + %s1848_s11]] }
  0x5b   : > { %v371_v45 = vstv %s1213_s17  ;;  %s1846_s17 = smov 96  }
  0x5c   : > { %v378_v48 = vstv %s1228_s23  ;;  %s239_s23 = scalar_lea.vmem %s1799_s3, %s1082_s30 }
  0x5d   : > { %v494_v60 = vstv %s1250_s9  ;;  %s1844_s9 = smov 112  }
  0x5e   : > { %v501_v0 = vstv %s1263_s20  ;;  %s1865_s20 = smov 114  }
  0xa9   : > { %v285_v5 = vpop.permute.xlu1 %284  ;;  %v278_v6 = vpop.permute.xlu0 %277 }
  0xad   : > { %v296_v9 = vpop.permute.xlu0 %295  ;;  %v287_v10 = vpop.permute.xlu1 %286 }
  0xae   : > { %v289_v33 = vsel %vm288_vm0, %v285_v5, %v287_v10  ;;  %v290_v34 = vsel %vm288_vm0, %v287_v10, %v285_v5  ;;  %v464_v5 = vstv %s1274_s25  ;;  %s1866_s25 = sadd.s32 2, %s1117_s18 }
  0xb1   : > { %v298_v15 = vpop.permute.xlu1 %297  ;;  %v280_v18 = vpop.permute.xlu0 %279 }
  0xb2   : > { %v282_v25 = vsel %vm281_vm2, %v278_v6, %v280_v18  ;;  %v283_v26 = vsel %vm281_vm2, %v280_v18, %v278_v6  ;;  %v300_v35 = vsel %vm299_vm1, %v296_v9, %v298_v15  ;;  %v301_v36 = vsel %vm299_vm1, %v298_v15, %v296_v9 }
  0xb3   : > { %v293_v39 = vsel %vm291_vm3, %v283_v26, %v289_v33  ;;  %v294_v40 = vsel %vm292_vm4, %v282_v25, %v290_v34  ;;  %v451_v15 = vcombine.high %v1309_v50, %v1309_v50 }
  0xb4   : > { %v437_v51 = vmul.f32 %v436_v13, %v293_v39  ;;  %v438_v52 = vmul.f32 %v436_v13, %v294_v40  ;;  %v351_v6 = vmul.f32 %v350_v11, %v293_v39  ;;  %v352_v9 = vmul.f32 %v350_v11, %v294_v40 }
  0xb5   : > { %v305_v37 = vpop.permute.xlu1 %304  ;;  %v303_v38 = vpop.permute.xlu0 %302  ;;  %v393_v10 = vmul.f32 %v392_v12, %v293_v39  ;;  %v394_v18 = vmul.f32 %v392_v12, %v294_v40  ;;  %v474_v33 = vmul.f32 %v473_v16, %v293_v39  ;;  %v475_v34 = vmul.f32 %v473_v16, %v294_v40 }
  0xb6   : > { %v307_v41 = vsel %vm306_vm5, %v303_v38, %v305_v37  ;;  %v308_v42 = vsel %vm306_vm5, %v305_v37, %v303_v38 }
  0xb7   : > { %v311_v43 = vsel %vm309_vm6, %v301_v36, %v307_v41  ;;  %v312_v44 = vsel %vm310_vm7, %v300_v35, %v308_v42  ;;  %v518_v35 = vmul.f32 %v517_v17, %v293_v39  ;;  %v519_v36 = vmul.f32 %v517_v17, %v294_v40 }
  0xb8   : > { %v442_v53 = vmul.f32 %v441_v22, %v311_v43  ;;  %v443_v54 = vmul.f32 %v441_v22, %v312_v44  ;;  %v356_v1 = vmul.f32 %v355_v19, %v311_v43  ;;  %v357_v2 = vmul.f32 %v355_v19, %v312_v44 }
  0xb9   : > { %v316_v55 = vpop.permute.xlu1 %315  ;;  %v314_v56 = vpop.permute.xlu0 %313  ;;  %v399_v19 = vmul.f32 %v397_v21, %v312_v44  ;;  %v398_v22 = vmul.f32 %v397_v21, %v311_v43  ;;  %v480_v25 = vmul.f32 %v478_v23, %v312_v44  ;;  %v479_v41 = vmul.f32 %v478_v23, %v311_v43 }
  0xba   : > { %v444_v61 = vadd.f32 %v442_v53, %v437_v51  ;;  %v445_v62 = vadd.f32 %v443_v54, %v438_v52  ;;  %v318_v26 = vsel %vm317_vm9, %v314_v56, %v316_v55  ;;  %v319_v12 = vsel %vm317_vm9, %v316_v55, %v314_v56 }
  0xbb   : > { %v359_v21 = vadd.f32 %v357_v2, %v352_v9  ;;  %v358_v32 = vadd.f32 %v356_v1, %v351_v6  ;;  %v523_v42 = vmul.f32 %v522_v24, %v311_v43  ;;  %v524_v51 = vmul.f32 %v522_v24, %v312_v44 }
  0xbc   : > { %v401_v52 = vadd.f32 %v399_v19, %v394_v18  ;;  %v400_v53 = vadd.f32 %v398_v22, %v393_v10  ;;  %v482_v17 = vadd.f32 %v480_v25, %v475_v34  ;;  %v454_v56 = vadd.f32 %v451_v15, %v445_v62 }
  0xbd   : > { %v323_v13 = vpop.permute.xlu1 %322  ;;  %v321_v14 = vpop.permute.xlu0 %320  ;;  %v368_v40 = vadd.f32 %v365_v47, %v359_v21  ;;  %v367_v55 = vadd.f32 %v1259_v28, %v358_v32  ;;  %v453_v47 = vadd.f32 %v1309_v50, %v444_v61  ;;  %v481_v18 = vadd.f32 %v479_v41, %v474_v33 }
  0xbe   : > { %v325_v20 = vsel %vm324_vm8, %v321_v14, %v323_v13  ;;  %v326_v11 = vsel %vm324_vm8, %v323_v13, %v321_v14  ;;  %v410_v14 = vadd.f32 %v407_v57, %v401_v52  ;;  %v409_v15 = vadd.f32 %v1267_v29, %v400_v53 }
  0xbf   : > { %v1352_v30 = vsel %vm327_vm10, %v319_v12, %v325_v20  ;;  %v1356_v31 = vsel %vm328_vm11, %v318_v26, %v326_v11  ;;  %v526_v19 = vadd.f32 %v524_v51, %v519_v36  ;;  %v525_v29 = vadd.f32 %v523_v42, %v518_v35 }
  0xc0   : > { %v458_v16 = vmul.f32 %v457_v27, %v1352_v30  ;;  %v459_v39 = vmul.f32 %v457_v27, %v1356_v31  ;;  %v373_v54 = vmul.f32 %v371_v45, %v1356_v31  ;;  %v372_v23 = vmul.f32 %v371_v45, %v1352_v30 }
  0xc1   : > { %v334_v37 = vpop.permute.xlu1 %333  ;;  %v332_v38 = vpop.permute.xlu0 %331  ;;  %v415_v27 = vmul.f32 %v413_v58, %v1356_v31  ;;  %v414_v44 = vmul.f32 %v413_v58, %v1352_v30  ;;  %v496_v26 = vmul.f32 %v494_v60, %v1356_v31  ;;  %v495_v57 = vmul.f32 %v494_v60, %v1352_v30 }
  0xc2   : > { %v336_v28 = vsel %vm335_vm12, %v332_v38, %v334_v37  ;;  %v337_v45 = vsel %vm335_vm12, %v334_v37, %v332_v38  ;;  %v460_v58 = vadd.f32 %v458_v16, %v453_v47  ;;  %v461_v61 = vadd.f32 %v459_v39, %v454_v56 }
  0xc3   : > { %v375_v62 = vadd.f32 %v373_v54, %v368_v40  ;;  %v374_v10 = vadd.f32 %v372_v23, %v367_v55  ;;  %v416_v12 = vadd.f32 %v414_v44, %v409_v15  ;;  %v538_v21 = vstv %s1388_s10  ;;  %s1518_s10 = sld [smem:[#allocation4 + %s1866_s25]] }
  0xc4   : > { %v491_v33 = vadd.f32 %v488_v63, %v482_v17  ;;  %v490_v60 = vadd.f32 %v1300_v46, %v481_v18  ;;  %v545_v51 = vstv %s1408_s12  ;;  %v540_v63 = vmul.f32 %v538_v21, %v1356_v31  ;;  %s1867_s12 = sadd.s32 7, %s1117_s18 }
  0xc5   : > { %v341_v24 = vpop.permute.xlu1 %340  ;;  %v339_v43 = vpop.permute.xlu0 %338  ;;  %v539_v52 = vmul.f32 %v538_v21, %v1352_v30  ;;  %v535_v46 = vadd.f32 %v532_v4, %v526_v19  ;;  %s1522_s21 = sld [smem:[#allocation4 + %s1867_s12]]  ;;  %s1873_s12 = sadd.s32 15, %s1117_s18 }
  0xc6   : > { %v343_v1 = vsel %vm1838_vm13, %v339_v43, %v341_v24  ;;  %v344_v2 = vsel %vm1838_vm13, %v341_v24, %v339_v43  ;;  %v498_v42 = vadd.f32 %v496_v26, %v491_v33  ;;  %vm510_vm13 = vcmp.lt.s32.totalorder %v1145_v3, 16 }
  0xc7   : > { %v347_v6 = vsel %vm1837_vm14, %v337_v45, %v343_v1  ;;  %v348_v50 = vsel %vm1836_vm15, %v336_v28, %v344_v2  ;;  %v542_v40 = vadd.f32 %v540_v63, %v535_v46  ;;  %vm387_vm15 = vcmp.lt.s32.totalorder %v1145_v3, 96 }
  0xc8   : > { %v380_v9 = vmul.f32 %v378_v48, %v348_v50  ;;  %v379_v13 = vmul.f32 %v378_v48, %v347_v6  ;;  %v422_v22 = vmul.f32 %v420_v59, %v348_v50  ;;  %v421_v25 = vmul.f32 %v420_v59, %v347_v6 }
  0xc9   : > { %v417_v48 = vadd.f32 %v415_v27, %v410_v14  ;;  %v465_v32 = vmul.f32 %v464_v5, %v347_v6  ;;  %v466_v59 = vmul.f32 %v464_v5, %v348_v50  ;;  %v503_v34 = vmul.f32 %v501_v0, %v348_v50 }
  0xca   : > { %v382_v20 = vadd.f32 %v380_v9, %v375_v62  ;;  %v381_v11 = vadd.f32 %v379_v13, %v374_v10  ;;  %v502_v35 = vmul.f32 %v501_v0, %v347_v6  ;;  %v423_v37 = vadd.f32 %v421_v25, %v416_v12 }
  0xcb   : > { %v424_v36 = vadd.f32 %v422_v22, %v417_v48  ;;  %v467_v38 = vadd.f32 %v465_v32, %v460_v58  ;;  %v468_v41 = vadd.f32 %v466_v59, %v461_v61  ;;  %v497_v5 = vadd.f32 %v495_v57, %v490_v60  ;;  %v559_v58 = vld [vmem:[%s239_s23] sm:$0xff]  ;;  %s1526_s23 = sld [smem:[#allocation4 + %s1868_s22]] }
  0xcc   : > { %385 = vrot.lane.b32.xlu1 %v382_v20, %s1846_s17  ;;  %383 = vrot.lane.b32.xlu0 %v381_v11, %s1846_s17  ;;  %v534_v0 = vadd.f32 %v1306_v49, %v525_v29  ;;  %v505_v16 = vadd.f32 %v503_v34, %v498_v42  ;;  %v547_v53 = vmul.f32 %v545_v51, %v348_v50  ;;  %vm1839_vm14 = vcmp.lt.s32.totalorder %v1145_v3, 112  ;;  %s1549_s22 = sld [smem:[#allocation4 + %s1873_s12]]  ;;  %s1878_s12 = sadd.s32 16, %s1117_s18 }
  0xcd   : > { %v504_v39 = vadd.f32 %v502_v35, %v497_v5  ;;  %v546_v17 = vmul.f32 %v545_v51, %v347_v6  ;;  %v561_v10 = vcombine.high %v559_v58, %v559_v58  ;;  %s1569_s11 = sld [smem:[#allocation4 + %s1878_s12]]  ;;  %v632_v57 = vstv %s1518_s10  ;;  %s1881_s10 = sadd.s32 3, %s1117_s18 }
  0xce   : > { %v541_v54 = vadd.f32 %v539_v52, %v534_v0  ;;  %v549_v31 = vadd.f32 %v547_v53, %v542_v40  ;;  %v666_v29 = vstv %s1522_s21  ;;  %s1593_s21 = sld [smem:[#allocation4 + %s1881_s10]] }
  0xcf   : > { %s1597_s12 = sld [smem:[#allocation4 + %s411_s6]] }
  0xd0   : > { %427 = vrot.lane.b32.xlu1 %v424_v36, %s1844_s9  ;;  %425 = vrot.lane.b32.xlu0 %v423_v37, %s1844_s9  ;;  %v548_v55 = vadd.f32 %v546_v17, %v541_v54  ;;  %s1624_s6 = sld [smem:[#allocation4 + %s418_s13]] }
  0xd1   : > { %v732_v59 = vstv %s1526_s23  ;;  %s1882_s23 = sadd.s32 4, %s1117_s18  ;;  %s1643_s13 = sld [smem:[#allocation4 + %s462_s24]] }
  0xd2   : > { %s1712_s24 = sld [smem:[#allocation4 + %s536_s8]]  ;;  %s1889_s8 = sadd.s32 24, %s1117_s18 }
  0xd4   : > { %508 = vrot.lane.b32.xlu1 %v505_v16, %s1842_s19  ;;  %506 = vrot.lane.b32.xlu0 %v504_v39, %s1842_s19  ;;  %s1876_s19 = sadd.s32 1, %s1117_s18 }
  0xd5   : > { %s1561_s9 = sld [smem:[#allocation4 + %s1876_s19]]  ;;  %s1880_s19 = sadd.s32 13, %s1117_s18 }
  0xd8   : > { %552 = vrot.lane.b32.xlu1 %v549_v31, %s1840_s16  ;;  %550 = vrot.lane.b32.xlu0 %v548_v55, %s1840_s16 }
 0x13e   : > { %v386_v49 = vpop.permute.xlu1 %385  ;;  %v384_v4 = vpop.permute.xlu0 %383 }
 0x13f   : > { %v388_v24 = vsel %vm387_vm15, %v384_v4, %v386_v49  ;;  %v389_v43 = vsel %vm387_vm15, %v386_v49, %v384_v4 }
 0x142   : > { %v428_v30 = vpop.permute.xlu1 %427  ;;  %v426_v23 = vpop.permute.xlu0 %425 }
 0x143   : > { %v430_v27 = vsel %vm1839_vm14, %v426_v23, %v428_v30  ;;  %v431_v44 = vsel %vm1839_vm14, %v428_v30, %v426_v23  ;;  %vm554_vm14 = vcmp.lt.s32.totalorder %v1145_v3, 32 }
 0x144   : > { %v432_v47 = vadd.f32 %v430_v27, %v388_v24  ;;  %v433_v56 = vadd.f32 %v431_v44, %v389_v43  ;;  %v626_v43 = vstv %s1561_s9  ;;  %v726_v44 = vstv %s1569_s11  ;;  %s1731_s11 = sld [smem:[#allocation4 + %s1889_s8]]  ;;  %s1892_s9 = smov 16  }
 0x146   : > { %v509_v28 = vpop.permute.xlu1 %508  ;;  %v469_v45 = vadd.f32 %v467_v38, %v432_v47  ;;  %v470_v1 = vadd.f32 %v468_v41, %v433_v56  ;;  %v507_v2 = vpop.permute.xlu0 %506  ;;  %v722_v38 = vstv %s1549_s22  ;;  %s244_s22 = scalar_lea.vmem %s1800_s4, %s1082_s30 }
 0x147   : > { %v511_v6 = vsel %vm510_vm13, %v507_v2, %v509_v28  ;;  %v512_v50 = vsel %vm510_vm13, %v509_v28, %v507_v2 }
 0x148   : > { %v513_v61 = vadd.f32 %v512_v50, %v469_v45  ;;  %v514_v62 = vadd.f32 %v511_v6, %v470_v1 }
 0x14a   : > { %v553_v9 = vpop.permute.xlu1 %552  ;;  %v551_v13 = vpop.permute.xlu0 %550 }
 0x14b   : > { %v555_v14 = vsel %vm554_vm14, %v551_v13, %v553_v9  ;;  %v556_v15 = vsel %vm554_vm14, %v553_v9, %v551_v13 }
 0x14c   : > { %v557_v18 = vadd.f32 %v556_v15, %v513_v61  ;;  %v558_v19 = vadd.f32 %v555_v14, %v514_v62  ;;  %v638_v61 = vstv %s1593_s21  ;;  %v672_v62 = vstv %s1597_s12 }
 0x14e   : > { %v1480_v20 = vsub.f32 %v557_v18, %v559_v58  ;;  %v1482_v11 = vsub.f32 %v558_v19, %v561_v10  ;;  %v678_v19 = vstv %s1624_s6 }
 0x150   : > { %565 = vrot.lane.b32.xlu0 %v1480_v20, %s1858_s26  ;;  %567 = vrot.lane.b32.xlu1 %v1482_v11, %s1858_s26  ;;  %s1869_s26 = sadd.s32 22, %s1117_s18  ;;  %v1602_v42 = vmul.f32 %v632_v57, %v1480_v20  ;;  %v1609_v51 = vmul.f32 %v632_v57, %v1482_v11  ;;  %v1620_v52 = vmul.f32 %v666_v29, %v1480_v20 }
 0x151   : > { %v1627_v46 = vmul.f32 %v666_v29, %v1482_v11  ;;  %v1639_v40 = vmul.f32 %v732_v59, %v1480_v20  ;;  %v1658_v23 = vmul.f32 %v732_v59, %v1482_v11 }
 0x154   : > { %571 = vrot.lane.b32.xlu0 %v1480_v20, %s1859_s28  ;;  %573 = vrot.lane.b32.xlu1 %v1482_v11, %s1859_s28  ;;  %s1530_s28 = sld [smem:[#allocation4 + %s1869_s26]]  ;;  %s1874_s26 = sadd.s32 20, %s1117_s18 }
 0x155   : > { %s1553_s16 = sld [smem:[#allocation4 + %s1874_s26]]  ;;  %s1879_s26 = sadd.s32 21, %s1117_s18 }
 0x158   : > { %579 = vrot.lane.b32.xlu0 %v1480_v20, %s1860_s29  ;;  %581 = vrot.lane.b32.xlu1 %v1482_v11, %s1860_s29  ;;  %s1533_s29 = sld [smem:[#allocation4 + %s1117_s18]] }
 0x15a   : > { %v768_v33 = vstv %s1530_s28 }
 0x15b   : > { %v758_v41 = vstv %s1553_s16  ;;  %s1893_s16 = smov 32  }
 0x15c   : > { %585 = vrot.lane.b32.xlu0 %v1480_v20, %s1861_s5  ;;  %587 = vrot.lane.b32.xlu1 %v1482_v11, %s1861_s5  ;;  %s1870_s5 = sadd.s32 12, %s1117_s18 }
 0x15e   : > { %v622_v12 = vstv %s1533_s29 }
 0x160   : > { %593 = vrot.lane.b32.xlu0 %v1480_v20, %s1862_s7  ;;  %595 = vrot.lane.b32.xlu1 %v1482_v11, %s1862_s7  ;;  %s1537_s7 = sld [smem:[#allocation4 + %s1870_s5]]  ;;  %s1875_s5 = sadd.s32 11, %s1117_s18 }
 0x164   : > { %599 = vrot.lane.b32.xlu0 %v1480_v20, %s1863_s27  ;;  %601 = vrot.lane.b32.xlu1 %v1482_v11, %s1863_s27  ;;  %s1871_s27 = sadd.s32 5, %s1117_s18 }
 0x166   : > { %v702_v34 = vstv %s1537_s7  ;;  %s1606_s7 = sld [smem:[#allocation4 + %s1882_s23]] }
 0x167   : > { %v1661_v24 = vmul.f32 %v702_v34, %v1480_v20  ;;  %v704_v47 = vmul.f32 %v702_v34, %v1482_v11 }
 0x168   : > { %607 = vrot.lane.b32.xlu0 %v1480_v20, %s1864_s14  ;;  %609 = vrot.lane.b32.xlu1 %v1482_v11, %s1864_s14  ;;  %s1541_s14 = sld [smem:[#allocation4 + %s1871_s27]] }
 0x169   : > { %s1557_s27 = sld [smem:[#allocation4 + %s1875_s5]] }
 0x16a   : > { %s1576_s5 = sld [smem:[#allocation4 + %s1879_s26]]  ;;  %s1884_s26 = sadd.s32 19, %s1117_s18 }
 0x16c   : > { %613 = vrot.lane.b32.xlu0 %v1480_v20, %s1865_s20  ;;  %615 = vrot.lane.b32.xlu1 %v1482_v11, %s1865_s20  ;;  %s1872_s20 = sadd.s32 10, %s1117_s18  ;;  %v644_v13 = vstv %s1606_s7 }
 0x16d   : > { %s1545_s25 = sld [smem:[#allocation4 + %s1872_s20]]  ;;  %s1877_s20 = sadd.s32 6, %s1117_s18 }
 0x16e   : > { %s1565_s17 = sld [smem:[#allocation4 + %s1877_s20]]  ;;  %v656_v60 = vstv %s1541_s14  ;;  %s1883_s14 = sadd.s32 18, %s1117_s18 }
 0x16f   : > { %s1580_s20 = sld [smem:[#allocation4 + %s1880_s19]]  ;;  %v696_v53 = vstv %s1557_s27  ;;  %s1890_s18 = smov 96  }
 0x170   : > { %s1631_s19 = sld [smem:[#allocation4 + %s1884_s26]]  ;;  %v762_v50 = vstv %s1576_s5 }
 0x173   : > { %v692_v35 = vstv %s1545_s25  ;;  %s1613_s25 = sld [smem:[#allocation4 + %s1883_s14]] }
 0x174   : > { %v660_v27 = vstv %s1565_s17  ;;  %s1891_s17 = smov 112  }
 0x175   : > { %v708_v58 = vstv %s1580_s20 }
 0x179   : > { %v738_v14 = vstv %s1613_s25 }
 0x1c2   : > { %v566_v22 = vpop.permute.xlu0 %565  ;;  %v568_v25 = vpop.permute.xlu1 %567 }
 0x1c3   : > { %v569_v5 = vsel %vm281_vm2, %v566_v22, %v568_v25  ;;  %v570_v63 = vsel %vm281_vm2, %v568_v25, %v566_v22  ;;  %v744_v22 = vstv %s1631_s19  ;;  %vm1887_vm2 = vcmp.ge.s32.totalorder %v1181_v7, 2 }
 0x1c6   : > { %v572_v48 = vpop.permute.xlu0 %571  ;;  %v574_v26 = vpop.permute.xlu1 %573 }
 0x1c7   : > { %v575_v36 = vsel %vm288_vm0, %v572_v48, %v574_v26  ;;  %v576_v37 = vsel %vm288_vm0, %v574_v26, %v572_v48  ;;  %vm1885_vm0 = vcmp.lt.s32.totalorder %v1145_v3, 114 }
 0x1c8   : > { %v577_v0 = vsel %vm291_vm3, %v570_v63, %v575_v36  ;;  %v578_v16 = vsel %vm292_vm4, %v569_v5, %v576_v37  ;;  %vm1888_vm3 = vcmp.ge.s32.totalorder %v1191_v8, 2  ;;  %vm1894_vm4 = vcmp.lt.s32.totalorder %v1145_v3, 112 }
 0x1c9   : > { %v693_v56 = vmul.f32 %v692_v35, %v577_v0  ;;  %v694_v28 = vmul.f32 %v692_v35, %v578_v16  ;;  %v623_v25 = vmul.f32 %v622_v12, %v577_v0  ;;  %v624_v48 = vmul.f32 %v622_v12, %v578_v16 }
 0x1ca   : > { %v580_v21 = vpop.permute.xlu0 %579  ;;  %v582_v32 = vpop.permute.xlu1 %581  ;;  %v657_v26 = vmul.f32 %v656_v60, %v577_v0 }
 0x1cb   : > { %v583_v54 = vsel %vm299_vm1, %v580_v21, %v582_v32  ;;  %v584_v31 = vsel %vm299_vm1, %v582_v32, %v580_v21  ;;  %v714_v21 = vstv %s1643_s13  ;;  %v658_v32 = vmul.f32 %v656_v60, %v578_v16  ;;  %vm1886_vm1 = vmmov %vm1885_vm0 }
 0x1ce   : > { %v586_v39 = vpop.permute.xlu0 %585  ;;  %v588_v17 = vpop.permute.xlu1 %587 }
 0x1cf   : > { %v589_v55 = vsel %vm306_vm5, %v586_v39, %v588_v17  ;;  %v590_v49 = vsel %vm306_vm5, %v588_v17, %v586_v39  ;;  %v723_v17 = vmul.f32 %v722_v38, %v577_v0  ;;  %vm1895_vm5 = vmmov %vm1894_vm4 }
 0x1d0   : > { %v591_v4 = vsel %vm309_vm6, %v584_v31, %v589_v55  ;;  %v592_v30 = vsel %vm310_vm7, %v583_v54, %v590_v49  ;;  %v724_v54 = vmul.f32 %v722_v38, %v578_v16  ;;  %v759_v31 = vmul.f32 %v758_v41, %v577_v0 }
 0x1d1   : > { %v697_v45 = vmul.f32 %v696_v53, %v591_v4  ;;  %v698_v1 = vmul.f32 %v696_v53, %v592_v30  ;;  %v627_v15 = vmul.f32 %v626_v43, %v591_v4  ;;  %v628_v18 = vmul.f32 %v626_v43, %v592_v30 }
 0x1d2   : > { %v594_v2 = vpop.permute.xlu0 %593  ;;  %v596_v6 = vpop.permute.xlu1 %595  ;;  %v661_v59 = vmul.f32 %v660_v27, %v591_v4  ;;  %v662_v36 = vmul.f32 %v660_v27, %v592_v30  ;;  %v727_v37 = vmul.f32 %v726_v44, %v591_v4  ;;  %v760_v55 = vmul.f32 %v758_v41, %v578_v16 }
 0x1d3   : > { %v699_v9 = vadd.f32 %v697_v45, %v693_v56  ;;  %v700_v10 = vadd.f32 %v698_v1, %v694_v28  ;;  %v597_v12 = vsel %vm317_vm9, %v594_v2, %v596_v6  ;;  %v598_v5 = vsel %vm317_vm9, %v596_v6, %v594_v2 }
 0x1d4   : > { %v629_v39 = vadd.f32 %v627_v15, %v623_v25  ;;  %v630_v53 = vadd.f32 %v628_v18, %v624_v48  ;;  %v728_v27 = vmul.f32 %v726_v44, %v592_v30  ;;  %v763_v56 = vmul.f32 %v762_v50, %v591_v4 }
 0x1d5   : > { %v764_v28 = vmul.f32 %v762_v50, %v592_v30  ;;  %v663_v45 = vadd.f32 %v661_v59, %v657_v26  ;;  %v664_v6 = vadd.f32 %v662_v36, %v658_v32  ;;  %v729_v15 = vadd.f32 %v727_v37, %v723_v17 }
 0x1d6   : > { %v600_v57 = vpop.permute.xlu0 %599  ;;  %v602_v29 = vpop.permute.xlu1 %601  ;;  %v635_v18 = vadd.f32 %v1602_v42, %v629_v39  ;;  %v636_v0 = vadd.f32 %v1609_v51, %v630_v53  ;;  %v705_v50 = vadd.f32 %v1661_v24, %v699_v9  ;;  %v730_v8 = vadd.f32 %v728_v27, %v724_v54 }
 0x1d7   : > { %v603_v34 = vsel %vm324_vm8, %v600_v57, %v602_v29  ;;  %v604_v35 = vsel %vm324_vm8, %v602_v29, %v600_v57  ;;  %v669_v7 = vadd.f32 %v1620_v52, %v663_v45  ;;  %v670_v29 = vadd.f32 %v1627_v46, %v664_v6 }
 0x1d8   : > { %v1690_v63 = vsel %vm327_vm10, %v598_v5, %v603_v34  ;;  %v1694_v60 = vsel %vm328_vm11, %v597_v12, %v604_v35  ;;  %v765_v32 = vadd.f32 %v763_v56, %v759_v31  ;;  %v766_v12 = vadd.f32 %v764_v28, %v760_v55 }
 0x1d9   : > { %v709_v1 = vmul.f32 %v708_v58, %v1690_v63  ;;  %v710_v2 = vmul.f32 %v708_v58, %v1694_v60  ;;  %v639_v38 = vmul.f32 %v638_v61, %v1690_v63  ;;  %v640_v41 = vmul.f32 %v638_v61, %v1694_v60 }
 0x1da   : > { %v608_v49 = vpop.permute.xlu0 %607  ;;  %v610_v43 = vpop.permute.xlu1 %609  ;;  %v673_v30 = vmul.f32 %v672_v62, %v1690_v63  ;;  %v674_v44 = vmul.f32 %v672_v62, %v1694_v60  ;;  %v706_v58 = vadd.f32 %v704_v47, %v700_v10  ;;  %v740_v52 = vmul.f32 %v738_v14, %v1694_v60 }
 0x1db   : > { %v611_v42 = vsel %vm335_vm12, %v608_v49, %v610_v43  ;;  %v612_v51 = vsel %vm335_vm12, %v610_v43, %v608_v49  ;;  %v711_v47 = vadd.f32 %v709_v1, %v705_v50  ;;  %v641_v9 = vadd.f32 %v639_v38, %v635_v18 }
 0x1dc   : > { %v712_v62 = vadd.f32 %v710_v2, %v706_v58  ;;  %v642_v26 = vadd.f32 %v640_v41, %v636_v0  ;;  %v675_v37 = vadd.f32 %v673_v30, %v669_v7  ;;  %v676_v46 = vadd.f32 %v674_v44, %v670_v29 }
 0x1dd   : > { %v774_v5 = vstv %s1712_s24  ;;  %v735_v53 = vadd.f32 %v1639_v40, %v729_v15  ;;  %v769_v56 = vmul.f32 %v768_v33, %v1480_v20  ;;  %v780_v28 = vstv %s1731_s11 }
 0x1de   : > { %v614_v16 = vpop.permute.xlu0 %613  ;;  %v616_v4 = vpop.permute.xlu1 %615 }
 0x1df   : > { %v617_v61 = vsel %vm1885_vm0, %v614_v16, %v616_v4  ;;  %v618_v25 = vsel %vm1886_vm1, %v616_v4, %v614_v16  ;;  %v771_v45 = vadd.f32 %v769_v56, %v765_v32 }
 0x1e0   : > { %v619_v48 = vsel %vm1887_vm2, %v612_v51, %v617_v61  ;;  %v620_v24 = vsel %vm1888_vm3, %v611_v42, %v618_v25 }
 0x1e1   : > { %v645_v10 = vmul.f32 %v644_v13, %v619_v48  ;;  %v646_v57 = vmul.f32 %v644_v13, %v620_v24  ;;  %v679_v35 = vmul.f32 %v678_v19, %v619_v48  ;;  %v680_v36 = vmul.f32 %v678_v19, %v620_v24 }
 0x1e2   : > { %v739_v13 = vmul.f32 %v738_v14, %v1690_v63  ;;  %v715_v39 = vmul.f32 %v714_v21, %v619_v48  ;;  %v716_v19 = vmul.f32 %v714_v21, %v620_v24  ;;  %v745_v17 = vmul.f32 %v744_v22, %v619_v48 }
 0x1e3   : > { %v647_v59 = vadd.f32 %v645_v10, %v641_v9  ;;  %v648_v34 = vadd.f32 %v646_v57, %v642_v26  ;;  %v736_v14 = vadd.f32 %v1658_v23, %v730_v8  ;;  %v746_v54 = vmul.f32 %v744_v22, %v620_v24 }
 0x1e4   : > { %v681_v31 = vadd.f32 %v679_v35, %v675_v37  ;;  %v682_v55 = vadd.f32 %v680_v36, %v676_v46  ;;  %v717_v49 = vadd.f32 %v715_v39, %v711_v47  ;;  %v718_v43 = vadd.f32 %v716_v19, %v712_v62 }
 0x1e5   : > { %649 = vrot.lane.b32.xlu0 %v647_v59, %s1890_s18  ;;  %651 = vrot.lane.b32.xlu1 %v648_v34, %s1890_s18  ;;  %v741_v27 = vadd.f32 %v739_v13, %v735_v53  ;;  %v770_v21 = vmul.f32 %v768_v33, %v1482_v11  ;;  %v742_v40 = vadd.f32 %v740_v52, %v736_v14 }
 0x1e6   : > { %v775_v23 = vmul.f32 %v774_v5, %v1690_v63  ;;  %v776_v22 = vmul.f32 %v774_v5, %v1694_v60  ;;  %v781_v15 = vmul.f32 %v780_v28, %v619_v48  ;;  %v782_v18 = vmul.f32 %v780_v28, %v620_v24 }
 0x1e7   : > { %v772_v1 = vadd.f32 %v770_v21, %v766_v12  ;;  %v747_v2 = vadd.f32 %v745_v17, %v741_v27  ;;  %v748_v6 = vadd.f32 %v746_v54, %v742_v40 }
 0x1e8   : > { %v777_v20 = vadd.f32 %v775_v23, %v771_v45 }
 0x1e9   : > { %683 = vrot.lane.b32.xlu0 %v681_v31, %s1891_s17  ;;  %685 = vrot.lane.b32.xlu1 %v682_v55, %s1891_s17  ;;  %v778_v11 = vadd.f32 %v776_v22, %v772_v1 }
 0x1ea   : > { %v783_v33 = vadd.f32 %v781_v15, %v777_v20 }
 0x1eb   : > { %v784_v38 = vadd.f32 %v782_v18, %v778_v11 }
 0x1ed   : > { %749 = vrot.lane.b32.xlu0 %v747_v2, %s1892_s9  ;;  %751 = vrot.lane.b32.xlu1 %v748_v6, %s1892_s9 }
 0x1f1   : > { %785 = vrot.lane.b32.xlu0 %v783_v33, %s1893_s16  ;;  %787 = vrot.lane.b32.xlu1 %v784_v38, %s1893_s16 }
 0x257   : > { %v650_v63 = vpop.permute.xlu0 %649  ;;  %v652_v60 = vpop.permute.xlu1 %651 }
 0x258   : > { %v653_v16 = vsel %vm387_vm15, %v650_v63, %v652_v60  ;;  %v654_v4 = vsel %vm387_vm15, %v652_v60, %v650_v63 }
 0x25b   : > { %v684_v0 = vpop.permute.xlu0 %683  ;;  %v686_v41 = vpop.permute.xlu1 %685 }
 0x25c   : > { %v687_v30 = vsel %vm1894_vm4, %v684_v0, %v686_v41  ;;  %v688_v44 = vsel %vm1895_vm5, %v686_v41, %v684_v0 }
 0x25d   : > { %v689_v50 = vadd.f32 %v687_v30, %v653_v16  ;;  %v690_v58 = vadd.f32 %v688_v44, %v654_v4 }
 0x25f   : > { %v750_v42 = vpop.permute.xlu0 %749  ;;  %v719_v51 = vadd.f32 %v717_v49, %v689_v50  ;;  %v720_v61 = vadd.f32 %v718_v43, %v690_v58  ;;  %v752_v25 = vpop.permute.xlu1 %751 }
 0x260   : > { %v753_v48 = vsel %vm510_vm13, %v750_v42, %v752_v25  ;;  %v754_v24 = vsel %vm510_vm13, %v752_v25, %v750_v42 }
 0x261   : > { %v755_v47 = vadd.f32 %v754_v24, %v719_v51  ;;  %v756_v62 = vadd.f32 %v753_v48, %v720_v61 }
 0x263   : > { %v786_v9 = vpop.permute.xlu0 %785  ;;  %v788_v10 = vpop.permute.xlu1 %787 }
 0x264   : > { %v789_v26 = vsel %vm554_vm14, %v786_v9, %v788_v10  ;;  %v790_v57 = vsel %vm554_vm14, %v788_v10, %v786_v9 }
 0x265   : > { %v791_v7 = vadd.f32 %v790_v57, %v755_v47  ;;  %v792_v29 = vadd.f32 %v789_v26, %v756_v62 }
 0x267   : > { %v795_v8 = vcombine.low %v791_v7, %v792_v29 }
 0x269   : > { %797 = vst [vmem:[%s244_s22] sm:$0xff] %v795_v8 }
 0x26a PF: > { %s16_s15 = sadd.s32 1, %s994_s15  }
 0x26b   : > { %p13_p5 = scmp.ge.s32.totalorder %s16_s15, 4  }
 0x26d   :  { %15 = sbr.rel (!%p13_p5) target bundleno = 2 (0x2), region = 78 }
 0x274   :  { %819 = vsyncpa [#allocation3], 1 }
 0x275   :  { %821 = vsyncpa [#allocation3 + $0x1], 1 }
 0x276   :  { %822 = vsyncpa [#allocation5], 1 }

</bundles_post_ra>
